<compile_context>
chip_gen: v5e
topology: v5e:2x2
jax: 0.10.0
libtpu: 0.0.40
codegen_flags: <defaults>
</compile_context>

<pallas_src>
import functools

import jax
import jax.numpy as jnp
from jax.experimental import pallas as pl
from jax.experimental.pallas import tpu as pltpu


def _sparse_gp_tile_kernel(params_ref, xcol_ref, xrow_i_ref, xrow_j_ref,
                           zcol_ref, zrow_ref, b_ref, w_ref,
                           mu_ref, cov_ref):
    """One (tm, tn) tile of cov_f, plus (at j == 0) the (1, tm) slice of mu_f.

    params_ref : SMEM (2,)     -> [sig**2, 0.5 / l**2]
    xcol_ref   : VMEM (tm, 1)  -> X_test rows of this tile-row (column layout)
    xrow_i_ref : VMEM (1, tm)  -> same values, lane-dense row layout (for mu)
    xrow_j_ref : VMEM (1, tn)  -> X_test cols of this tile-col
    zcol_ref   : VMEM (M, 1)   -> clipped pseudo-inputs Z (column)
    zrow_ref   : VMEM (1, M)   -> clipped pseudo-inputs Z (row)
    b_ref      : VMEM (M, M)   -> B = Kmm^{-1} (S - Kmm) Kmm^{-1}
    w_ref      : VMEM (M, 1)   -> w = Kmm^{-1} m
    mu_ref     : VMEM (1, tm)  -> output mu_f slice (lane-dense)
    cov_ref    : VMEM (tm, tn) -> output cov_f tile (lane-dense)
    """
    sig2 = params_ref[0]
    c = params_ref[1]                      # 0.5 / l**2

    x_col = xcol_ref[...]                  # (tm, 1)
    x_row_j = xrow_j_ref[...]              # (1, tn)
    z_col = zcol_ref[...]                  # (M, 1)
    z_row = zrow_ref[...]                  # (1, M)

    # Knn tile: (tm, tn), lane-dense.
    d_nn = x_col - x_row_j
    knn = sig2 * jnp.exp(-(d_nn * d_nn) * c)

    # Knm rows of this tile-row: (tm, M).
    d_nm = x_col - z_row
    knm_i = sig2 * jnp.exp(-(d_nm * d_nm) * c)

    # Knm^T cols of this tile-col: (M, tn), lane-dense.
    d_mn = z_col - x_row_j
    knmT_j = sig2 * jnp.exp(-(d_mn * d_mn) * c)

    # cov_tile = Knn + Knm_i @ B @ Knm_j^T, using only standard (dim1, dim0) matmuls.
    bk = jnp.dot(b_ref[...], knmT_j, preferred_element_type=jnp.float32)      # (M, tn)
    cov_ref[...] = knn + jnp.dot(knm_i, bk, preferred_element_type=jnp.float32)

    # mu slice of this tile-row, lane-dense (1, tm); computed once per tile-row.
    @pl.when(pl.program_id(1) == 0)
    def _():
        x_row_i = xrow_i_ref[...]                          # (1, tm)
        d_mi = z_col - x_row_i                             # (M, tm)
        knmT_i = sig2 * jnp.exp(-(d_mi * d_mi) * c)
        # (M,1) * (M,tm) -> sublane-reduce -> (1, tm): cheap rank-M contraction on XLU.
        mu_ref[...] = jnp.sum(w_ref[...] * knmT_i, axis=0, keepdims=True)


@functools.partial(jax.jit, static_argnames=("tile",))
def sparse_gp_forward(x_test, zi, x_min, x_max, m_vec, L_mat, sig, l, *, tile=128):
    """Pallas-backed equivalent of sparse_GP.forward(X_test) -> (mu_f, cov_f)."""
    x_test = jnp.asarray(x_test, jnp.float32).reshape(-1)
    n = x_test.shape[0]
    zi = jnp.asarray(zi, jnp.float32).reshape(-1)
    m_dim = zi.shape[0]
    m_vec = jnp.asarray(m_vec, jnp.float32).reshape(m_dim, 1)
    L_mat = jnp.asarray(L_mat, jnp.float32)
    sig = jnp.asarray(sig, jnp.float32)
    l = jnp.asarray(l, jnp.float32)

    # ----- parameter-only (M x M) glue, plain JAX -----
    # TODO(synk): torch.inverse / the M x M linear solves have no Pallas primitive;
    #             this N-independent work is done with jnp.linalg.solve here.
    z = jnp.clip(zi, x_min, x_max)                                   # Z_set()
    dz = z[:, None] - z[None, :]
    kmm = sig ** 2 * jnp.exp(-0.5 * dz * dz / l ** 2) \
        + 1e-3 * jnp.eye(m_dim, dtype=jnp.float32)
    s_mat = L_mat @ L_mat.T + 1e-3 * jnp.eye(m_dim, dtype=jnp.float32)
    # Exact fold of the forward algebra:
    #   cov = Knn + Knm @ B @ Knm^T   with  B = Kmm^{-1} (S - Kmm) Kmm^{-1}
    #   mu  = Knm @ w                 with  w = Kmm^{-1} m
    b_mat = jnp.linalg.solve(kmm, jnp.linalg.solve(kmm, s_mat - kmm).T)
    w_vec = jnp.linalg.solve(kmm, m_vec)                              # (M, 1)

    # ----- pad N to a multiple of the tile so every block is lane-aligned -----
    n_pad = pl.cdiv(n, tile) * tile
    xp = jnp.pad(x_test, (0, n_pad - n))
    gi = n_pad // tile
    gj = n_pad // tile

    params = jnp.stack([sig ** 2, 0.5 / (l ** 2)]).astype(jnp.float32)   # (2,)
    x_col = xp.reshape(n_pad, 1)
    x_row = xp.reshape(1, n_pad)
    z_col = z.reshape(m_dim, 1)
    z_row = z.reshape(1, m_dim)

    mu_row, cov_p = pl.pallas_call(
        _sparse_gp_tile_kernel,
        out_shape=(jax.ShapeDtypeStruct((1, n_pad), jnp.float32),
                   jax.ShapeDtypeStruct((n_pad, n_pad), jnp.float32)),
        grid=(gi, gj),
        in_specs=[
            pl.BlockSpec(memory_space=pltpu.MemorySpace.SMEM),            # params
            pl.BlockSpec((tile, 1), lambda i, j: (i, 0)),                 # X col, tile-row
            pl.BlockSpec((1, tile), lambda i, j: (0, i)),                 # X row, tile-row (mu)
            pl.BlockSpec((1, tile), lambda i, j: (0, j)),                 # X row, tile-col
            pl.BlockSpec((m_dim, 1), lambda i, j: (0, 0)),                # Z col
            pl.BlockSpec((1, m_dim), lambda i, j: (0, 0)),                # Z row
            pl.BlockSpec((m_dim, m_dim), lambda i, j: (0, 0)),            # B
            pl.BlockSpec((m_dim, 1), lambda i, j: (0, 0)),                # w
        ],
        out_specs=(
            pl.BlockSpec((1, tile), lambda i, j: (0, i)),                 # mu (lane-dense)
            pl.BlockSpec((tile, tile), lambda i, j: (i, j)),              # cov tile
        ),
        compiler_params=pltpu.CompilerParams(
            dimension_semantics=("parallel", "arbitrary")),
    )(params, x_col, x_row, x_row, z_col, z_row,
      b_mat.astype(jnp.float32), w_vec.astype(jnp.float32))

    mu_f = mu_row[0, :n].reshape(n, 1)
    cov_f = cov_p[:n, :n]
    return mu_f, cov_f


# ----------------------------- plain-JAX reference -----------------------------

def rbf_ref(x1, x2, sig, l):
    x1 = jnp.asarray(x1, jnp.float32).reshape(-1, 1)
    x2 = jnp.asarray(x2, jnp.float32).reshape(-1, 1)
    d = x1 - x2.T
    return sig ** 2 * jnp.exp(-0.5 * d * d / (l ** 2))


def forward_ref(x_test, zi, x_min, x_max, m_vec, L_mat, sig, l):
    m_dim = L_mat.shape[0]
    z = jnp.clip(jnp.asarray(zi, jnp.float32).reshape(-1), x_min, x_max)
    kmm = rbf_ref(z, z, sig, l) + 1e-3 * jnp.eye(m_dim, dtype=jnp.float32)
    knm = rbf_ref(x_test, z, sig, l)
    knn = rbf_ref(x_test, x_test, sig, l)
    kmm_inv = jnp.linalg.inv(kmm)                 # mirrors torch.inverse
    s_mat = L_mat @ L_mat.T + 1e-3 * jnp.eye(m_dim, dtype=jnp.float32)
    a = knm @ kmm_inv
    mu_f = a @ m_vec.reshape(m_dim, 1)
    cov_f = knn - a @ knm.T + a @ s_mat @ a.T
    return mu_f, cov_f


if __name__ == "__main__":
    key = jax.random.PRNGKey(0)
    k_x, k_noise, k_zs, k_l = jax.random.split(key, 4)

    # Deterministic "training data" and module parameters (mirrors __init__).
    N_train = 24
    M = 8
    l_param = jnp.float32(0.1)
    sig_param = jnp.float32(1.0)
    # sig_n is a module parameter but unused in forward().

    X = jax.random.uniform(k_x, (N_train,), jnp.float32, minval=-3.0, maxval=3.0)
    y = jnp.sin(X) + 0.1 * jax.random.normal(k_noise, (N_train,), jnp.float32)

    # Distinct inducing-point indices (the original randint may duplicate; distinct
    # points keep the tiny Kmm well conditioned for the f32 tolerance check).
    Zs = jax.random.permutation(k_zs, N_train)[:M]
    Zi = X[Zs]                                   # inducing-point locations (param)
    m_vec = y[Zs].reshape(M, 1)                  # variational mean (param)
    L_mat = jnp.tril(0.1 * jax.random.normal(k_l, (M, M), jnp.float32))

    x_min, x_max = X.min(), X.max()

    # Test inputs: not a multiple of the tile, to exercise the padding path.
    N_test = 300
    X_test = jnp.linspace(-3.0, 3.0, N_test, dtype=jnp.float32)

    mu_f, cov_f = sparse_gp_forward(X_test, Zi, x_min, x_max, m_vec, L_mat,
                                    sig_param, l_param, tile=128)
    jax.block_until_ready((mu_f, cov_f))

    mu_ref, cov_ref = forward_ref(X_test, Zi, x_min, x_max, m_vec, L_mat,
                                  sig_param, l_param)

    assert mu_f.shape == (N_test, 1) and cov_f.shape == (N_test, N_test)
    assert jnp.allclose(mu_f, mu_ref, rtol=2e-3, atol=2e-3), \
        float(jnp.max(jnp.abs(mu_f - mu_ref)))
    assert jnp.allclose(cov_f, cov_ref, rtol=2e-3, atol=2e-3), \
        float(jnp.max(jnp.abs(cov_f - cov_ref)))

    print("KERNEL_OK")
</pallas_src>

<mosaic_0001>
module attributes {stable_mosaic.version = 11 : i64} {
  func.func @_sparse_gp_tile_kernel(%arg0: i32, %arg1: i32, %arg2: memref<2xf32, #tpu.memory_space<smem>>, %arg3: memref<128x1xf32, #tpu.memory_space<vmem>>, %arg4: memref<1x128xf32, #tpu.memory_space<vmem>>, %arg5: memref<1x128xf32, #tpu.memory_space<vmem>>, %arg6: memref<8x1xf32, #tpu.memory_space<vmem>>, %arg7: memref<1x8xf32, #tpu.memory_space<vmem>>, %arg8: memref<8x8xf32, #tpu.memory_space<vmem>>, %arg9: memref<8x1xf32, #tpu.memory_space<vmem>>, %arg10: memref<1x128xf32, #tpu.memory_space<vmem>>, %arg11: memref<128x128xf32, #tpu.memory_space<vmem>>) attributes {dimension_semantics = [#tpu.dimension_semantics<parallel>, #tpu.dimension_semantics<arbitrary>], iteration_bounds = array<i64: 3, 3>, scalar_prefetch = 0 : i64, scratch_operands = 0 : i64, tpu.core_type = #tpu.core_type<tc>, window_params = [{transform_indices = @transform_0, window_bounds = array<i64: 2>}, {transform_indices = @transform_1, window_bounds = array<i64: 128, 1>}, {transform_indices = @transform_2, window_bounds = array<i64: 1, 128>}, {transform_indices = @transform_3, window_bounds = array<i64: 1, 128>}, {pipeline_mode = #tpu.pipeline_mode<synchronous>, transform_indices = @transform_4, window_bounds = array<i64: 8, 1>}, {pipeline_mode = #tpu.pipeline_mode<synchronous>, transform_indices = @transform_5, window_bounds = array<i64: 1, 8>}, {pipeline_mode = #tpu.pipeline_mode<synchronous>, transform_indices = @transform_6, window_bounds = array<i64: 8, 8>}, {pipeline_mode = #tpu.pipeline_mode<synchronous>, transform_indices = @transform_7, window_bounds = array<i64: 8, 1>}, {transform_indices = @transform_8, window_bounds = array<i64: 1, 128>}, {transform_indices = @transform_9, window_bounds = array<i64: 128, 128>}]} {
    %c0 = arith.constant 0 : index
    %0 = memref.load %arg2[%c0] : memref<2xf32, #tpu.memory_space<smem>>
    %c1 = arith.constant 1 : index
    %1 = memref.load %arg2[%c1] : memref<2xf32, #tpu.memory_space<smem>>
    %c0_0 = arith.constant 0 : index
    %c0_1 = arith.constant 0 : index
    %2 = vector.load %arg3[%c0_0, %c0_1] : memref<128x1xf32, #tpu.memory_space<vmem>>, vector<128x1xf32>
    %c0_2 = arith.constant 0 : index
    %c0_3 = arith.constant 0 : index
    %3 = vector.load %arg5[%c0_2, %c0_3] : memref<1x128xf32, #tpu.memory_space<vmem>>, vector<1x128xf32>
    %c0_4 = arith.constant 0 : index
    %c0_5 = arith.constant 0 : index
    %4 = vector.load %arg6[%c0_4, %c0_5] : memref<8x1xf32, #tpu.memory_space<vmem>>, vector<8x1xf32>
    %c0_6 = arith.constant 0 : index
    %c0_7 = arith.constant 0 : index
    %5 = vector.load %arg7[%c0_6, %c0_7] : memref<1x8xf32, #tpu.memory_space<vmem>>, vector<1x8xf32>
    %6 = vector.broadcast %2 : vector<128x1xf32> to vector<128x128xf32>
    %7 = vector.broadcast %3 : vector<1x128xf32> to vector<128x128xf32>
    %8 = arith.subf %6, %7 : vector<128x128xf32>
    %9 = arith.mulf %8, %8 : vector<128x128xf32>
    %cst = arith.constant 0.000000e+00 : f32
    %10 = vector.broadcast %cst : f32 to vector<128x128xf32>
    %11 = arith.subf %10, %9 : vector<128x128xf32>
    %12 = vector.broadcast %1 : f32 to vector<128x128xf32>
    %13 = arith.mulf %11, %12 : vector<128x128xf32>
    %14 = math.exp %13 : vector<128x128xf32>
    %15 = vector.broadcast %0 : f32 to vector<128x128xf32>
    %16 = arith.mulf %15, %14 : vector<128x128xf32>
    %17 = vector.broadcast %2 : vector<128x1xf32> to vector<128x8xf32>
    %18 = vector.broadcast %5 : vector<1x8xf32> to vector<128x8xf32>
    %19 = arith.subf %17, %18 : vector<128x8xf32>
    %20 = arith.mulf %19, %19 : vector<128x8xf32>
    %cst_8 = arith.constant 0.000000e+00 : f32
    %21 = vector.broadcast %cst_8 : f32 to vector<128x8xf32>
    %22 = arith.subf %21, %20 : vector<128x8xf32>
    %23 = vector.broadcast %1 : f32 to vector<128x8xf32>
    %24 = arith.mulf %22, %23 : vector<128x8xf32>
    %25 = math.exp %24 : vector<128x8xf32>
    %26 = vector.broadcast %0 : f32 to vector<128x8xf32>
    %27 = arith.mulf %26, %25 : vector<128x8xf32>
    %28 = vector.broadcast %4 : vector<8x1xf32> to vector<8x128xf32>
    %29 = vector.broadcast %3 : vector<1x128xf32> to vector<8x128xf32>
    %30 = arith.subf %28, %29 : vector<8x128xf32>
    %31 = arith.mulf %30, %30 : vector<8x128xf32>
    %cst_9 = arith.constant 0.000000e+00 : f32
    %32 = vector.broadcast %cst_9 : f32 to vector<8x128xf32>
    %33 = arith.subf %32, %31 : vector<8x128xf32>
    %34 = vector.broadcast %1 : f32 to vector<8x128xf32>
    %35 = arith.mulf %33, %34 : vector<8x128xf32>
    %36 = math.exp %35 : vector<8x128xf32>
    %37 = vector.broadcast %0 : f32 to vector<8x128xf32>
    %38 = arith.mulf %37, %36 : vector<8x128xf32>
    %c0_10 = arith.constant 0 : index
    %c0_11 = arith.constant 0 : index
    %39 = vector.load %arg8[%c0_10, %c0_11] : memref<8x8xf32, #tpu.memory_space<vmem>>, vector<8x8xf32>
    %cst_12 = arith.constant dense<0.000000e+00> : vector<8x128xf32>
    %40 = tpu.matmul %39, %38, %cst_12 {dimension_numbers = #tpu.dot_dimension_numbers<[1], [0], [0], [1], [0, 0, 1, 1], [], []>} : vector<8x8xf32>, vector<8x128xf32>, vector<8x128xf32> -> vector<8x128xf32>
    %cst_13 = arith.constant dense<0.000000e+00> : vector<128x128xf32>
    %41 = tpu.matmul %27, %40, %cst_13 {dimension_numbers = #tpu.dot_dimension_numbers<[1], [0], [0], [1], [0, 0, 1, 1], [], []>} : vector<128x8xf32>, vector<8x128xf32>, vector<128x128xf32> -> vector<128x128xf32>
    %42 = arith.addf %16, %41 : vector<128x128xf32>
    %c0_14 = arith.constant 0 : index
    %c0_15 = arith.constant 0 : index
    %43 = vector.load %arg11[%c0_14, %c0_15] : memref<128x128xf32, #tpu.memory_space<vmem>>, vector<128x128xf32>
    tpu.vector_store %arg11[%c0_14, %c0_15], %42 {strides = array<i32>} : memref<128x128xf32, #tpu.memory_space<vmem>>, vector<128x128xf32>,
    %c0_i32 = arith.constant 0 : i32
    %44 = arith.cmpi eq, %arg1, %c0_i32 : i32
    %45 = arith.extui %44 : i1 to i32
    %c0_i32_16 = arith.constant 0 : i32
    %46 = arith.cmpi ne, %45, %c0_i32_16 : i32
    scf.if %46 {
      %c0_17 = arith.constant 0 : index
      %c0_18 = arith.constant 0 : index
      %47 = vector.load %arg4[%c0_17, %c0_18] : memref<1x128xf32, #tpu.memory_space<vmem>>, vector<1x128xf32>
      %48 = vector.broadcast %4 : vector<8x1xf32> to vector<8x128xf32>
      %49 = vector.broadcast %47 : vector<1x128xf32> to vector<8x128xf32>
      %50 = arith.subf %48, %49 : vector<8x128xf32>
      %51 = arith.mulf %50, %50 : vector<8x128xf32>
      %cst_19 = arith.constant 0.000000e+00 : f32
      %52 = vector.broadcast %cst_19 : f32 to vector<8x128xf32>
      %53 = arith.subf %52, %51 : vector<8x128xf32>
      %54 = vector.broadcast %1 : f32 to vector<8x128xf32>
      %55 = arith.mulf %53, %54 : vector<8x128xf32>
      %56 = math.exp %55 : vector<8x128xf32>
      %57 = vector.broadcast %0 : f32 to vector<8x128xf32>
      %58 = arith.mulf %57, %56 : vector<8x128xf32>
      %c0_20 = arith.constant 0 : index
      %c0_21 = arith.constant 0 : index
      %59 = vector.load %arg9[%c0_20, %c0_21] : memref<8x1xf32, #tpu.memory_space<vmem>>, vector<8x1xf32>
      %60 = vector.broadcast %59 : vector<8x1xf32> to vector<8x128xf32>
      %61 = arith.mulf %60, %58 : vector<8x128xf32>
      %cst_22 = arith.constant dense<0.000000e+00> : vector<128xf32>
      %62 = vector.multi_reduction <add>, %61, %cst_22 [0] : vector<8x128xf32> to vector<128xf32>
      %63 = vector.shape_cast %62 : vector<128xf32> to vector<1x128xf32>
      %c0_23 = arith.constant 0 : index
      %c0_24 = arith.constant 0 : index
      %64 = vector.load %arg10[%c0_23, %c0_24] : memref<1x128xf32, #tpu.memory_space<vmem>>, vector<1x128xf32>
      tpu.vector_store %arg10[%c0_23, %c0_24], %63 {strides = array<i32>} : memref<1x128xf32, #tpu.memory_space<vmem>>, vector<1x128xf32>,
    } else {
    }
    return
  }
  func.func @transform_0(%arg0: i32, %arg1: i32) -> i32 {
    %c0_i32 = arith.constant 0 : i32
    %c0_i32_0 = arith.constant 0 : i32
    return %c0_i32 : i32
  }
  func.func @transform_1(%arg0: i32, %arg1: i32) -> (i32, i32) {
    %c0_i32 = arith.constant 0 : i32
    %c0_i32_0 = arith.constant 0 : i32
    return %arg0, %c0_i32 : i32, i32
  }
  func.func @transform_2(%arg0: i32, %arg1: i32) -> (i32, i32) {
    %c0_i32 = arith.constant 0 : i32
    %c0_i32_0 = arith.constant 0 : i32
    return %c0_i32, %arg0 : i32, i32
  }
  func.func @transform_3(%arg0: i32, %arg1: i32) -> (i32, i32) {
    %c0_i32 = arith.constant 0 : i32
    %c0_i32_0 = arith.constant 0 : i32
    return %c0_i32, %arg1 : i32, i32
  }
  func.func @transform_4(%arg0: i32, %arg1: i32) -> (i32, i32) {
    %c0_i32 = arith.constant 0 : i32
    %c0_i32_0 = arith.constant 0 : i32
    %c0_i32_1 = arith.constant 0 : i32
    return %c0_i32, %c0_i32_0 : i32, i32
  }
  func.func @transform_5(%arg0: i32, %arg1: i32) -> (i32, i32) {
    %c0_i32 = arith.constant 0 : i32
    %c0_i32_0 = arith.constant 0 : i32
    %c0_i32_1 = arith.constant 0 : i32
    return %c0_i32, %c0_i32_0 : i32, i32
  }
  func.func @transform_6(%arg0: i32, %arg1: i32) -> (i32, i32) {
    %c0_i32 = arith.constant 0 : i32
    %c0_i32_0 = arith.constant 0 : i32
    %c0_i32_1 = arith.constant 0 : i32
    return %c0_i32, %c0_i32_0 : i32, i32
  }
  func.func @transform_7(%arg0: i32, %arg1: i32) -> (i32, i32) {
    %c0_i32 = arith.constant 0 : i32
    %c0_i32_0 = arith.constant 0 : i32
    %c0_i32_1 = arith.constant 0 : i32
    return %c0_i32, %c0_i32_0 : i32, i32
  }
  func.func @transform_8(%arg0: i32, %arg1: i32) -> (i32, i32) {
    %c0_i32 = arith.constant 0 : i32
    %c0_i32_0 = arith.constant 0 : i32
    return %c0_i32, %arg0 : i32, i32
  }
  func.func @transform_9(%arg0: i32, %arg1: i32) -> (i32, i32) {
    %c0_i32 = arith.constant 0 : i32
    return %arg0, %arg1 : i32, i32
  }
}

</mosaic_0001>

<bundles_post_ra>
// kernel: custom-call.24
= control target key start
LH: loop header
LB: loop body
LE: loop exit
PB: predicated region body
PF: predicated region fallthrough
CT: control target
= control target key end

     0   :  { %5 = vsyncpa [#allocation4], 0  ;;  %s683_s12 = smov [#allocation0]   ;;  %s779_s0 = inlined_call_operand.vmem [shape: f32[8,8], index: 0, kind: input, shape index: {}]   ;;  %s780_s1 = inlined_call_operand.vmem [shape: f32[8,8], index: 1, kind: output, shape index: {0}]   ;;  %s781_s2 = inlined_call_operand.hbm [shape: s32[8], index: 2, kind: output, shape index: {1}]   ;;  %s782_s3 = inlined_call_operand.vmem [shape: s32[8], index: 3, kind: output, shape index: {2}]  }
   0x1   :  { %s687_s15 = smov %s779_s0  }
   0x2 LB: > { %v49_v0 = vld [vmem:[%s689_s15] sm:$0xff]  ;;  %s51_s15 = scalar_lea.vmem %s689_s15, 8   ;;  %s689_s15 = sphi %s687_s15, %s51_s15   ;;  %s685_s12 = sphi %s683_s12, %s52_s12  }
   0x3   : > { %50 = vst [vmem:[%s685_s12] sm:$0xff] %v49_v0  ;;  %s52_s12 = scalar_lea.vmem %s685_s12, 8   ;;  %p46_p0 = scmp.gt.s32.totalorder %s51_s15, %s779_s0 }
   0x4   :  { %v65_v2 = vlaneseq (%p46_p0)  ;;  %v703_v3 = vmov (%p46_p0), 0   ;;  %s735_s18 = smov (%p46_p0), 0  }
   0x5   :  { %48 = sbr.rel (!%p46_p0) target bundleno = 2 (0x2), region = 152  ;;  %64 = vst [vmem:[#allocation2] sm:$0x1] (%p46_p0), %v703_v3 }
   0x6   :  { %v732_v4 = vshrl.u32 (%p46_p0), %v65_v2, 7 }
   0x8   :  { %69 = vst [vmem:[#allocation7] sm:$0xff] (%p46_p0), %v732_v4 }
   0xa   :  { %v62_v1 = vld [vmem:[#allocation0] sm:$0xff] }
   0xb   :  { %63 = vst [vmem:[#allocation1] sm:$0xff] %v62_v1 }
   0xc LB: > { %v741_v7 = vstv %s693_s18  ;;  %s126_s0 = ssub.s32 128, %s693_s18  ;;  %v132_v38 = vand.u32 127, %v65_v2  ;;  %s138_s19 = scalar_lea.vmem [#allocation1], %s693_s18  ;;  %v135_v41 = vld [vmem:[#allocation2] ss:$0 sm:$0xff]  ;;  %s693_s18 = sphi %s735_s18, %s75_s18  }
   0xd   : > { %vm84_vm0 = vcmp.ge.s32.totalorder %v732_v4, %v741_v7  ;;  %s144_s22 = scalar_lea.vmem [#allocation7], %s693_s18  ;;  %vm164_vm12 = vcmp.gt.s32.totalorder %v732_v4, %v741_v7  ;;  %s75_s18 = sadd.s32 1, %s693_s18  }
   0xe   : > { %vm133_vm10 = vcmp.eq.s32.totalorder %v132_v38, %v741_v7  ;;  %p72_p1 = scmp.ge.s32.totalorder %s75_s18, 8  }
   0xf   : > { %v146_v43 = vld [vmem:[%s144_s22] ss:$0 sm:$0xff]  ;;  %s695_s26 = smov (%p72_p1), %s780_s1   ;;  %s699_s27 = smov (%p72_p1), [#allocation1]  }
  0x12   : > { %v80_v5 = vld [vmem:[#allocation1] sm:$0xff]  ;;  %v140_v39 = vld [vmem:[%s138_s19] ss:$0 sm:$0xff] }
  0x13   : > { %v81_v6 = vand.u32 2147483647, %v80_v5 }
  0x15   : > { %vm462_vm1 = vcmp.gt.f32.partialorder %v81_v6, -inf }
  0x16   : > { %vm88_vm2 = vmand %vm84_vm0, %vm462_vm1 }
  0x17   : > { %v89_v8 = vsel %vm88_vm2, %v732_v4, %v741_v7  ;;  %v90_v9 = vsel %vm88_vm2, %v81_v6, -inf  ;;  %vm181_vm2 = vmand %vm164_vm12, %vm133_vm10 }
  0x18   : > { %v91_v10 = vrot.slane %v90_v9, 1  ;;  %v92_v11 = vrot.slane %v89_v8, 1 }
  0x1a   : > { %vm93_vm3 = vcmp.ge.f32.partialorder %v91_v10, %v90_v9  ;;  %v96_v12 = vrot.slane %v91_v10, 1  ;;  %v97_v13 = vrot.slane %v92_v11, 1 }
  0x1b   : > { %v94_v14 = vsel %vm93_vm3, %v91_v10, %v90_v9  ;;  %v95_v15 = vsel %vm93_vm3, %v92_v11, %v89_v8  ;;  %vm156_vm3 = vcmp.gt.s32.totalorder %v132_v38, %v741_v7 }
  0x1c   : > { %vm98_vm4 = vcmp.ge.f32.partialorder %v96_v12, %v94_v14  ;;  %v101_v16 = vrot.slane %v96_v12, 1  ;;  %v102_v17 = vrot.slane %v97_v13, 1 }
  0x1d   : > { %v99_v18 = vsel %vm98_vm4, %v96_v12, %v94_v14  ;;  %v100_v19 = vsel %vm98_vm4, %v97_v13, %v95_v15 }
  0x1e   : > { %vm103_vm5 = vcmp.ge.f32.partialorder %v101_v16, %v99_v18  ;;  %v106_v20 = vrot.slane %v101_v16, 1  ;;  %v107_v21 = vrot.slane %v102_v17, 1 }
  0x1f   : > { %v104_v22 = vsel %vm103_vm5, %v101_v16, %v99_v18  ;;  %v105_v23 = vsel %vm103_vm5, %v102_v17, %v100_v19 }
  0x20   : > { %vm108_vm6 = vcmp.ge.f32.partialorder %v106_v20, %v104_v22  ;;  %v111_v24 = vrot.slane %v106_v20, 1  ;;  %v112_v25 = vrot.slane %v107_v21, 1 }
  0x21   : > { %v109_v26 = vsel %vm108_vm6, %v106_v20, %v104_v22  ;;  %v110_v27 = vsel %vm108_vm6, %v107_v21, %v105_v23 }
  0x22   : > { %vm113_vm7 = vcmp.ge.f32.partialorder %v111_v24, %v109_v26  ;;  %v116_v28 = vrot.slane %v111_v24, 1  ;;  %v117_v29 = vrot.slane %v112_v25, 1 }
  0x23   : > { %v114_v30 = vsel %vm113_vm7, %v111_v24, %v109_v26  ;;  %v115_v31 = vsel %vm113_vm7, %v112_v25, %v110_v27 }
  0x24   : > { %vm118_vm8 = vcmp.ge.f32.partialorder %v116_v28, %v114_v30  ;;  %v121_v32 = vrot.slane %v116_v28, 1  ;;  %v122_v33 = vrot.slane %v117_v29, 1 }
  0x25   : > { %v119_v34 = vsel %vm118_vm8, %v116_v28, %v114_v30  ;;  %v120_v35 = vsel %vm118_vm8, %v117_v29, %v115_v31 }
  0x26   : > { %vm123_vm9 = vcmp.ge.f32.partialorder %v121_v32, %v119_v34 }
  0x27   : > { %v125_v36 = vsel %vm123_vm9, %v122_v33, %v120_v35 }
  0x28   : > { %127 = vrot.lane.b32.xlu0 %v125_v36, %s126_s0 }
  0x9a   : > { %v128_v37 = vpop.permute.xlu0 %127 }
  0x9b   : > { %470 = vpush %v128_v37 }
  0xcc   : > { %s471_s20 = spop %470 }
  0xcd   : > { %v134_v40 = vstv %s471_s20  ;;  %s139_s21 = scalar_lea.vmem [#allocation1], %s471_s20  ;;  %s145_s23 = scalar_lea.vmem [#allocation7], %s471_s20 }
  0xce   : > { %v141_v42 = vld [vmem:[%s139_s21] ss:$0 sm:$0xff]  ;;  %v136_v45 = vsel %vm133_vm10, %v134_v40, %v135_v41 }
  0xcf   : > { %v147_v44 = vld [vmem:[%s145_s23] ss:$0 sm:$0xff]  ;;  %142 = vst [vmem:[%s139_s21] sm:$0x1] %v140_v39  ;;  %vm150_vm11 = vcmp.ne.f32.partialorder %v141_v42, 0.0  ;;  %v157_v61 = vsel %vm156_vm3, %v141_v42, 0.0 }
  0xd0   : > { %143 = vst [vmem:[%s138_s19] sm:$0x1] %v141_v42  ;;  %vm151_vm13 = vmand %vm133_vm10, %vm150_vm11 }
  0xd1   : > { %148 = vst [vmem:[%s145_s23] sm:$0x1] %v146_v43  ;;  %v152_v46 = vsel %vm151_vm13, %v141_v42, 1.0 }
  0xd2   : > { %149 = vst [vmem:[%s144_s22] sm:$0x1] %v147_v44  ;;  %v165_v47 = vsel %vm164_vm12, %v152_v46, 1.0 }
  0xd3   : > { %595 = vrcp.f32 %v165_v47  ;;  %137 = vst [vmem:[#allocation2] sm:$0x1] %v136_v45  ;;  %v177_v51 = vand.u32 2147483648, %v165_v47  ;;  %v175_v53 = vand.u32 2147483647, %v165_v47  ;;  %vm171_vm15 = vweird.f32 %v165_v47 }
  0xd5   : > { %v178_v55 = vor.u32 1.1754944e-38, %v177_v51  ;;  %vm176_vm1 = vcmp.eq.f32.partialorder %v175_v53, 8.507059e+37 }
  0xd7   : > { %v161_v57 = vld [vmem:[#allocation1] sm:$0xff] }
  0xd9   : > { %v596_v48 = vpop.eup %595  ;;  %v188_v1 = vld [vmem:[#allocation7] sm:$0xff] (%p72_p1) }
  0xda   : > { %v167_v49 = vmul.f32 %v596_v48, %v165_v47  ;;  %vm172_vm14 = vweird.f32 %v596_v48  ;;  %v239_v3 = vld [vmem:[#allocation2] sm:$0x1] (%p72_p1) }
  0xdb   : > { %vm173_vm0 = vmor %vm171_vm15, %vm172_vm14  ;;  %242 = vst [vmem:[#allocation3] sm:$0x1] (%p72_p1), %v239_v3 }
  0xdc   : > { %v168_v50 = vsub.f32 1.0, %v167_v49 }
  0xde   : > { %v169_v52 = vmul.f32 %v596_v48, %v168_v50 }
  0xe0   : > { %v170_v54 = vadd.f32 %v596_v48, %v169_v52 }
  0xe2   : > { %v174_v56 = vsel %vm173_vm0, %v596_v48, %v170_v54 }
  0xe3   : > { %v179_v58 = vsel %vm176_vm1, %v178_v55, %v174_v56 }
  0xe4   : > { %v180_v59 = vmul.f32 %v179_v58, %v161_v57 }
  0xe6   : > { %v182_v60 = vsel %vm181_vm2, %v180_v59, 0.0 }
  0xe7   : > { %183 = vadd.xlane.f32.xlu0 %v182_v60 }
 0x110   :  { %204 = vxpose.xlu0.b32.start.end [1/1] (short) (narrow) (%p72_p1), %v188_v1, 8 }
 0x15a   : > { %v184_v62 = vpop.xlane.xlu0 %183 }
 0x15b   : > { %v185_v63 = vmul.f32 %v184_v62, %v157_v61  ;;  %74 = sbr.rel (!%p72_p1) target bundleno = 12 (0xc), region = 163 }
 0x15d   : > { %v186_v0 = vsub.f32 %v180_v59, %v185_v63 }
 0x15f   : > { %187 = vst [vmem:[#allocation1] sm:$0xff] %v186_v0 }
 0x1b4   :  { %v220_v5 = vpop.trf.xlu0 }
 0x1b5   :  { %236 = vst [vmem:[#allocation5] sm:$0x1] %v220_v5 }
 0x1bc   :  { %v245_v6 = vld [vmem:[#allocation5] sm:$0x1] }
 0x1bd   :  { %248 = vst [vmem:[#allocation6] sm:$0x1] %v245_v6 }
 0x1be LB: > { %v292_v7 = vld [vmem:[%s701_s27] sm:$0xff]  ;;  %s294_s27 = scalar_lea.vmem %s701_s27, 8   ;;  %s701_s27 = sphi %s699_s27, %s294_s27   ;;  %s697_s26 = sphi %s695_s26, %s295_s26  }
 0x1bf   : > { %293 = vst [vmem:[%s697_s26] sm:$0xff] %v292_v7  ;;  %s295_s26 = scalar_lea.vmem %s697_s26, 8   ;;  %p289_p2 = scmp.gt.s32.totalorder %s294_s27, [#allocation1] }
 0x1c0   :  { %s312_s30 = sshll.u32 (%p289_p2), %s781_s2, 4  ;;  %s704_s4 = smov (%p289_p2), [#allocation3]   ;;  %s313_s30 = int_to_ptr.hbm [resolvable:$true] %s312_s30 }
 0x1c1   :  { %291 = sbr.rel (!%p289_p2) target bundleno = 446 (0x1be), region = 185  ;;  %s310_s1 = sshll.u32 (%p289_p2), %s704_s4, 4  ;;  %s311_s1 = int_to_ptr.vmem [resolvable:$true] %s310_s1 }
 0x1c2   :  { %315 = dma.vmem_to_hbm [thread:$0]  (%p289_p2), %s311_s1, 16, %s313_s30, [#allocation4]  }
 0x1c4   :  { %v372_v2 = vld [vmem:[#allocation6] sm:$0x1] (%p289_p2) }
 0x1c5   :  { %373 = vst [vmem:[%s782_s3] sm:$0x1] (%p289_p2), %v372_v2 }
 0x1c6   :  { %681 = dma.done.wait [#allocation4], 16  }
 0x1c7   :  { %682 = vsyncadd [#allocation4], 4294967280 }
 0x1c8   :  { %380 = vsyncpa [#allocation4], 1 }

// kernel: custom-call.25
= control target key start
LH: loop header
LB: loop body
LE: loop exit
PB: predicated region body
PF: predicated region fallthrough
CT: control target
= control target key end

     0   :  { %v35_v0 = vlaneseq  ;;  %v207_v18 = vmov -1.0   ;;  %s249_s0 = inlined_call_operand.vmem [shape: f32[1,8,8], index: 0, kind: input, shape index: {}]   ;;  %s250_s1 = inlined_call_operand.vmem [shape: f32[1,8,8], index: 1, kind: output, shape index: {}]  }
   0x1   :  { %v30_v1 = vld [vmem:[%s249_s0] sm:$0xff] }
   0x2   :  { %v221_v2 = vand.u32 127, %v35_v0  ;;  %v39_v3 = vshrl.u32 %v35_v0, 7 }
   0x4   :  { %vm41_vm0 = vcmp.eq.s32.totalorder %v39_v3, %v221_v2  ;;  %vm37_vm1 = vcmp.lt.s32.totalorder %v221_v2, 8  ;;  %vm46_vm2 = vcmp.le.s32.totalorder %v39_v3, %v221_v2  ;;  %vm73_vm8 = vcmp.eq.s32.totalorder %v221_v2, 7 }
   0x5   :  { %v43_v4 = vsel %vm41_vm0, %v30_v1, 0.0  ;;  %vm47_vm3 = vmand %vm46_vm2, %vm37_vm1  ;;  %vm70_vm9 = vcmp.eq.s32.totalorder %v221_v2, %v39_v3  ;;  %v74_v19 = vsel %vm73_vm8, 1.0, %v207_v18  ;;  %vm81_vm10 = vcmp.eq.s32.totalorder %v221_v2, 6 }
   0x6   :  { %44 = vadd.xlane.f32.xlu0 %v43_v4  ;;  %v48_v13 = vsel %vm47_vm3, %v30_v1, 0.0  ;;  %v75_v20 = vsel %vm70_vm9, %v74_v19, 0.0  ;;  %vm91_vm11 = vcmp.eq.s32.totalorder %v221_v2, 5  ;;  %vm101_vm12 = vcmp.eq.s32.totalorder %v221_v2, 4 }
   0x7   :  { %vm111_vm13 = vcmp.eq.s32.totalorder %v221_v2, 3  ;;  %vm121_vm14 = vcmp.eq.s32.totalorder %v221_v2, 2  ;;  %vm131_vm15 = vcmp.eq.s32.totalorder %v221_v2, 1  ;;  %vm140_vm0 = vcmp.eq.s32.totalorder %v221_v2, 0 }
  0x79   :  { %v224_v5 = vpop.xlane.xlu0 %44 }
  0x7a   :  { %205 = vrcp.f32 %v224_v5  ;;  %v60_v9 = vand.u32 2147483648, %v224_v5  ;;  %v58_v11 = vand.u32 2147483647, %v224_v5  ;;  %vm54_vm5 = vweird.f32 %v224_v5 }
  0x7c   :  { %v61_v14 = vor.u32 1.1754944e-38, %v60_v9  ;;  %vm59_vm7 = vcmp.eq.f32.partialorder %v58_v11, 8.507059e+37 }
  0x80   :  { %v206_v6 = vpop.eup %205 }
  0x81   :  { %v50_v7 = vmul.f32 %v206_v6, %v224_v5  ;;  %vm55_vm4 = vweird.f32 %v206_v6 }
  0x82   :  { %vm56_vm6 = vmor %vm54_vm5, %vm55_vm4 }
  0x83   :  { %v51_v8 = vsub.f32 1.0, %v50_v7 }
  0x85   :  { %v52_v10 = vmul.f32 %v206_v6, %v51_v8 }
  0x87   :  { %v53_v12 = vadd.f32 %v206_v6, %v52_v10 }
  0x89   :  { %v57_v15 = vsel %vm56_vm6, %v206_v6, %v53_v12 }
  0x8a   :  { %v62_v16 = vsel %vm59_vm7, %v61_v14, %v57_v15 }
  0x8b   :  { %v63_v17 = vmul.f32 %v62_v16, %v48_v13 }
  0x8d   :  { %64 = vst [vmem:[#allocation2] sm:$0xff] %v63_v17 }
  0x94   :  { %v77_v21 = vld [vmem:[#allocation2 + $0x6] ss:$0 sm:$0xff]  ;;  %v87_v24 = vld [vmem:[#allocation2 + $0x5] ss:$0 sm:$0xff]  ;;  %v97_v29 = vld [vmem:[#allocation2 + $0x4] ss:$0 sm:$0xff] }
  0x95   :  { %v78_v22 = vxor.u32 2147483648, %v77_v21  ;;  %v88_v26 = vxor.u32 2147483648, %v87_v24  ;;  %v98_v31 = vxor.u32 2147483648, %v97_v29  ;;  %v107_v34 = vld [vmem:[#allocation2 + $0x3] ss:$0 sm:$0xff] }
  0x96   :  { %v108_v36 = vxor.u32 2147483648, %v107_v34  ;;  %v117_v39 = vld [vmem:[#allocation2 + $0x2] ss:$0 sm:$0xff]  ;;  %v127_v44 = vld [vmem:[#allocation2 + $0x1] ss:$0 sm:$0xff] }
  0x97   :  { %v82_v23 = vmul.f32 %v78_v22, %v75_v20  ;;  %v118_v41 = vxor.u32 2147483648, %v117_v39  ;;  %v128_v46 = vxor.u32 2147483648, %v127_v44  ;;  %v136_v49 = vld [vmem:[#allocation2] ss:$0 sm:$0xff] }
  0x98   :  { %v137_v51 = vxor.u32 2147483648, %v136_v49 }
  0x99   :  { %83 = vadd.xlane.f32.xlu0 %v82_v23 }
 0x10c   :  { %v84_v25 = vpop.xlane.xlu0 %83 }
 0x10d   :  { %v85_v27 = vsel %vm81_vm10, %v84_v25, %v75_v20 }
 0x10e   :  { %v92_v28 = vmul.f32 %v88_v26, %v85_v27 }
 0x110   :  { %93 = vadd.xlane.f32.xlu1 %v92_v28 }
 0x183   :  { %v94_v30 = vpop.xlane.xlu1 %93 }
 0x184   :  { %v95_v32 = vsel %vm91_vm11, %v94_v30, %v85_v27 }
 0x185   :  { %v102_v33 = vmul.f32 %v98_v31, %v95_v32 }
 0x187   :  { %103 = vadd.xlane.f32.xlu1 %v102_v33 }
 0x1fa   :  { %v104_v35 = vpop.xlane.xlu1 %103 }
 0x1fb   :  { %v105_v37 = vsel %vm101_vm12, %v104_v35, %v95_v32 }
 0x1fc   :  { %v112_v38 = vmul.f32 %v108_v36, %v105_v37 }
 0x1fe   :  { %113 = vadd.xlane.f32.xlu2 %v112_v38 }
 0x271   :  { %v114_v40 = vpop.xlane.xlu2 %113 }
 0x272   :  { %v115_v42 = vsel %vm111_vm13, %v114_v40, %v105_v37 }
 0x273   :  { %v122_v43 = vmul.f32 %v118_v41, %v115_v42 }
 0x275   :  { %123 = vadd.xlane.f32.xlu2 %v122_v43 }
 0x2e8   :  { %v124_v45 = vpop.xlane.xlu2 %123 }
 0x2e9   :  { %v125_v47 = vsel %vm121_vm14, %v124_v45, %v115_v42 }
 0x2ea   :  { %v132_v48 = vmul.f32 %v128_v46, %v125_v47 }
 0x2ec   :  { %133 = vadd.xlane.f32.xlu0 %v132_v48 }
 0x35f   :  { %v134_v50 = vpop.xlane.xlu0 %133 }
 0x360   :  { %v135_v52 = vsel %vm131_vm15, %v134_v50, %v125_v47 }
 0x361   :  { %v141_v53 = vmul.f32 %v137_v51, %v135_v52 }
 0x363   :  { %142 = vadd.xlane.f32.xlu1 %v141_v53 }
 0x3d6   :  { %v143_v54 = vpop.xlane.xlu1 %142 }
 0x3d7   :  { %v144_v55 = vsel %vm140_vm0, %v143_v54, %v135_v52 }
 0x3d8   :  { %v159_v56 = vmul.f32 %v144_v55, %v62_v16 }
 0x3da   :  { %v161_v57 = vsel %vm54_vm5, %v144_v55, %v159_v56 }
 0x3db   :  { %192 = vst [vmem:[%s250_s1] sm:$0xff] %v161_v57 }

// kernel: custom-call.26
= control target key start
LH: loop header
LB: loop body
LE: loop exit
PB: predicated region body
PF: predicated region fallthrough
CT: control target
= control target key end

     0   :  { %v35_v0 = vlaneseq  ;;  %v208_v18 = vmov -1.0   ;;  %s250_s0 = inlined_call_operand.vmem [shape: f32[1,8,8], index: 0, kind: input, shape index: {}]   ;;  %s251_s1 = inlined_call_operand.vmem [shape: f32[1,8,8], index: 1, kind: output, shape index: {}]  }
   0x1   :  { %v30_v1 = vld [vmem:[%s250_s0] sm:$0xff] }
   0x2   :  { %v222_v2 = vand.u32 127, %v35_v0  ;;  %v39_v3 = vshrl.u32 %v35_v0, 7 }
   0x4   :  { %vm41_vm0 = vcmp.eq.s32.totalorder %v39_v3, %v222_v2  ;;  %vm37_vm1 = vcmp.lt.s32.totalorder %v222_v2, 8  ;;  %vm46_vm2 = vcmp.ge.s32.totalorder %v39_v3, %v222_v2  ;;  %vm73_vm8 = vcmp.eq.s32.totalorder %v222_v2, 0 }
   0x5   :  { %v43_v4 = vsel %vm41_vm0, %v30_v1, 0.0  ;;  %vm47_vm3 = vmand %vm46_vm2, %vm37_vm1  ;;  %vm70_vm9 = vcmp.eq.s32.totalorder %v222_v2, %v39_v3  ;;  %v74_v19 = vsel %vm73_vm8, 1.0, %v208_v18  ;;  %vm81_vm10 = vcmp.eq.s32.totalorder %v222_v2, 1 }
   0x6   :  { %44 = vadd.xlane.f32.xlu0 %v43_v4  ;;  %v48_v13 = vsel %vm47_vm3, %v30_v1, 0.0  ;;  %v75_v20 = vsel %vm70_vm9, %v74_v19, 0.0  ;;  %vm91_vm11 = vcmp.eq.s32.totalorder %v222_v2, 2  ;;  %vm101_vm12 = vcmp.eq.s32.totalorder %v222_v2, 3 }
   0x7   :  { %vm111_vm13 = vcmp.eq.s32.totalorder %v222_v2, 4  ;;  %vm121_vm14 = vcmp.eq.s32.totalorder %v222_v2, 5  ;;  %vm131_vm15 = vcmp.eq.s32.totalorder %v222_v2, 6  ;;  %vm141_vm0 = vcmp.eq.s32.totalorder %v222_v2, 7 }
  0x79   :  { %v225_v5 = vpop.xlane.xlu0 %44 }
  0x7a   :  { %206 = vrcp.f32 %v225_v5  ;;  %v60_v9 = vand.u32 2147483648, %v225_v5  ;;  %v58_v11 = vand.u32 2147483647, %v225_v5  ;;  %vm54_vm5 = vweird.f32 %v225_v5 }
  0x7c   :  { %v61_v14 = vor.u32 1.1754944e-38, %v60_v9  ;;  %vm59_vm7 = vcmp.eq.f32.partialorder %v58_v11, 8.507059e+37 }
  0x80   :  { %v207_v6 = vpop.eup %206 }
  0x81   :  { %v50_v7 = vmul.f32 %v207_v6, %v225_v5  ;;  %vm55_vm4 = vweird.f32 %v207_v6 }
  0x82   :  { %vm56_vm6 = vmor %vm54_vm5, %vm55_vm4 }
  0x83   :  { %v51_v8 = vsub.f32 1.0, %v50_v7 }
  0x85   :  { %v52_v10 = vmul.f32 %v207_v6, %v51_v8 }
  0x87   :  { %v53_v12 = vadd.f32 %v207_v6, %v52_v10 }
  0x89   :  { %v57_v15 = vsel %vm56_vm6, %v207_v6, %v53_v12 }
  0x8a   :  { %v62_v16 = vsel %vm59_vm7, %v61_v14, %v57_v15 }
  0x8b   :  { %v63_v17 = vmul.f32 %v62_v16, %v48_v13 }
  0x8d   :  { %64 = vst [vmem:[#allocation2] sm:$0xff] %v63_v17 }
  0x94   :  { %v77_v21 = vld [vmem:[#allocation2 + $0x1] ss:$0 sm:$0xff]  ;;  %v87_v24 = vld [vmem:[#allocation2 + $0x2] ss:$0 sm:$0xff]  ;;  %v97_v29 = vld [vmem:[#allocation2 + $0x3] ss:$0 sm:$0xff] }
  0x95   :  { %v78_v22 = vxor.u32 2147483648, %v77_v21  ;;  %v88_v26 = vxor.u32 2147483648, %v87_v24  ;;  %v98_v31 = vxor.u32 2147483648, %v97_v29  ;;  %v107_v34 = vld [vmem:[#allocation2 + $0x4] ss:$0 sm:$0xff] }
  0x96   :  { %v108_v36 = vxor.u32 2147483648, %v107_v34  ;;  %v117_v39 = vld [vmem:[#allocation2 + $0x5] ss:$0 sm:$0xff]  ;;  %v127_v44 = vld [vmem:[#allocation2 + $0x6] ss:$0 sm:$0xff] }
  0x97   :  { %v82_v23 = vmul.f32 %v78_v22, %v75_v20  ;;  %v118_v41 = vxor.u32 2147483648, %v117_v39  ;;  %v128_v46 = vxor.u32 2147483648, %v127_v44  ;;  %v137_v49 = vld [vmem:[#allocation2 + $0x7] ss:$0 sm:$0xff] }
  0x98   :  { %v138_v51 = vxor.u32 2147483648, %v137_v49 }
  0x99   :  { %83 = vadd.xlane.f32.xlu0 %v82_v23 }
 0x10c   :  { %v84_v25 = vpop.xlane.xlu0 %83 }
 0x10d   :  { %v85_v27 = vsel %vm81_vm10, %v84_v25, %v75_v20 }
 0x10e   :  { %v92_v28 = vmul.f32 %v88_v26, %v85_v27 }
 0x110   :  { %93 = vadd.xlane.f32.xlu1 %v92_v28 }
 0x183   :  { %v94_v30 = vpop.xlane.xlu1 %93 }
 0x184   :  { %v95_v32 = vsel %vm91_vm11, %v94_v30, %v85_v27 }
 0x185   :  { %v102_v33 = vmul.f32 %v98_v31, %v95_v32 }
 0x187   :  { %103 = vadd.xlane.f32.xlu1 %v102_v33 }
 0x1fa   :  { %v104_v35 = vpop.xlane.xlu1 %103 }
 0x1fb   :  { %v105_v37 = vsel %vm101_vm12, %v104_v35, %v95_v32 }
 0x1fc   :  { %v112_v38 = vmul.f32 %v108_v36, %v105_v37 }
 0x1fe   :  { %113 = vadd.xlane.f32.xlu2 %v112_v38 }
 0x271   :  { %v114_v40 = vpop.xlane.xlu2 %113 }
 0x272   :  { %v115_v42 = vsel %vm111_vm13, %v114_v40, %v105_v37 }
 0x273   :  { %v122_v43 = vmul.f32 %v118_v41, %v115_v42 }
 0x275   :  { %123 = vadd.xlane.f32.xlu2 %v122_v43 }
 0x2e8   :  { %v124_v45 = vpop.xlane.xlu2 %123 }
 0x2e9   :  { %v125_v47 = vsel %vm121_vm14, %v124_v45, %v115_v42 }
 0x2ea   :  { %v132_v48 = vmul.f32 %v128_v46, %v125_v47 }
 0x2ec   :  { %133 = vadd.xlane.f32.xlu0 %v132_v48 }
 0x35f   :  { %v134_v50 = vpop.xlane.xlu0 %133 }
 0x360   :  { %v135_v52 = vsel %vm131_vm15, %v134_v50, %v125_v47 }
 0x361   :  { %v142_v53 = vmul.f32 %v138_v51, %v135_v52 }
 0x363   :  { %143 = vadd.xlane.f32.xlu1 %v142_v53 }
 0x3d6   :  { %v144_v54 = vpop.xlane.xlu1 %143 }
 0x3d7   :  { %v145_v55 = vsel %vm141_vm0, %v144_v54, %v135_v52 }
 0x3d8   :  { %v160_v56 = vmul.f32 %v145_v55, %v62_v16 }
 0x3da   :  { %v162_v57 = vsel %vm54_vm5, %v145_v55, %v160_v56 }
 0x3db   :  { %193 = vst [vmem:[%s251_s1] sm:$0xff] %v162_v57 }

// kernel: sparse_gp_forward.1
= control target key start
LH: loop header
LB: loop body
LE: loop exit
PB: predicated region body
PF: predicated region fallthrough
CT: control target
= control target key end

     0   :  { %15 = vsyncpa [#allocation3], 0  ;;  %s1474_s30 = smov 0   ;;  %s1476_s10 = smov 0   ;;  %s1863_s0 = inlined_call_operand.vmem [shape: f32[2], index: 0, kind: input, shape index: {}]   ;;  %s1864_s1 = inlined_call_operand.vmem [shape: f32[384,1], index: 1, kind: input, shape index: {}]   ;;  %s1865_s2 = inlined_call_operand.vmem [shape: f32[1,384], index: 2, kind: input, shape index: {}, may-alias: {2,3}]   ;;  %s1866_s3 = inlined_call_operand.vmem [shape: f32[1,384], index: 3, kind: input, shape index: {}, may-alias: {2,3}]   ;;  %s1867_s4 = inlined_call_operand.vmem [shape: f32[8,1], index: 4, kind: input, shape index: {}]   ;;  %s1868_s5 = inlined_call_operand.vmem [shape: f32[1,8], index: 5, kind: input, shape index: {}]   ;;  %s1869_s6 = inlined_call_operand.vmem [shape: f32[8,8], index: 6, kind: input, shape index: {}]   ;;  %s1870_s7 = inlined_call_operand.vmem [shape: f32[8,1], index: 7, kind: input, shape index: {}]   ;;  %s1871_s8 = inlined_call_operand.vmem [shape: f32[1,384], index: 8, kind: output, shape index: {0}]   ;;  %s1872_s9 = inlined_call_operand.vmem [shape: f32[384,384], index: 9, kind: output, shape index: {1}]  }
   0x1   :  { %s1478_s11 = smov 0   ;;  %s1480_s12 = smov 0  }
   0x2   :  { %s1482_s13 = smov 0   ;;  %s1484_s14 = smov 0  }
   0x3   :  { %s1486_s15 = smov 0  }
   0x4 LB: > { %s1163_s16 = sadd.s32 4294967295, %s1419_s15   ;;  %s30_s17 = sadd.s32 1, %s1411_s13  ;;  %s1419_s15 = sphi %s1486_s15, %s21_s15   ;;  %s1415_s14 = sphi %s1484_s14, %s1882_s14   ;;  %s1411_s13 = sphi %s1482_s13, %s1881_s13   ;;  %s1407_s12 = sphi %s1480_s12, %s1880_s12   ;;  %s1403_s11 = sphi %s1478_s11, %s1879_s11   ;;  %s1399_s10 = sphi %s1476_s10, %s1878_s10   ;;  %s1395_s30 = sphi %s1474_s30, %s1877_s30  }
   0x5   : > { %p31_p0 = scmp.ge.s32.totalorder %s30_s17, 3  ;;  %s33_s18 = sadd.s32 1, %s1415_s14 }
   0x6   : > { %s251_s19 = sadd.s32 1, %s1399_s10  ;;  %p261_p1 = scmp.ne.s32.totalorder %s1399_s10, %s1395_s30 }
   0x7   : > { %s1884_s17 = smov (%p31_p0, %s30_s17), 0  ;;  %s1886_s18 = smov (!%p31_p0, %s33_s18), %s1415_s14 }
   0x8   : > { %s247_s20 = ssub.s32 %s1411_s13, %s1884_s17  ;;  %p262_p2 = scmp.eq.s32.totalorder %s1163_s16, 8 }
   0x9   : > { %p35_p3 = scmp.ge.s32.totalorder %s1886_s18, 3  ;;  %p1165_p4 = scmp.ge.s32.totalorder %s1419_s15, 1 }
   0xa   : > { %p1521_p5 = por %p262_p2, %p261_p1  ;;  %p275_p6 = scmp.lt.s32.totalorder %s1419_s15, 10 }
   0xb   : > { %s1888_s18 = smov (%p35_p3, %s1886_s18), 0  ;;  %p1210_p8 = scmp.eq.s32.totalorder %s1163_s16, 0 }
   0xc   : > { %1875 = sst [smem:[#allocation6_spill]] %s1888_s18  ;;  %p276_p7 = pnand %p1165_p4, %p275_p6 }
   0xd   : > { %s246_s22 = ssub.s32 %s1415_s14, %s1888_s18  ;;  %s287_s26 = sshll.u32 %s1863_s0, 4  ;;  %s288_s26 = int_to_ptr.vmem [resolvable:$true] %s287_s26 }
   0xe   : > { %s248_s23 = sor.u32 %s247_s20, %s246_s22  ;;  %p1206_p9 = pneg %p276_p7 }
   0xf   : > { %p249_p10 = scmp.eq.s32.totalorder %s248_s23, 0  ;;  %s1421_s28 = smov [#allocation2]  }
  0x10   : > { %p1207_p11 = pnand %p1210_p8, %p1206_p9  ;;  %333 = sbr.rel (%p276_p7) target bundleno = 612 (0x264), region = 52 }
  0x11   : > { %s1534_s27 = scalar_select %p249_p10, %s1399_s10, %s251_s19  }
  0x12   : > { %1209 = dma.vmem_to_smem (!%p1207_p11), %s288_s26, 16, %s1421_s28, [#allocation3]  }
  0x15   : > { %1390 = dma.done.wait (%p1210_p8), [#allocation3], 16  }
  0x16   : > { %1392 = vsyncadd (%p1210_p8), [#allocation3], 4294967280 }
  0x17   : > { %340 = sfence }
  0x18   : > { %v414_v0 = vld [vmem:[%s1867_s4] sm:$0xff]  ;;  %s1171_s16 = sshll.u32 %s1407_s12, 4  ;;  %p388_p12 = scmp.lt.s32.totalorder %s1403_s11, 2  ;;  %v1422_v1 = vmov 0   ;;  %vm741_vm0 = vcmask 64512  }
  0x19   : > { %1271 = vset.pattern.permute.xlu0 %v1422_v1  ;;  %p380_p13 = scmp.lt.s32.totalorder %s1171_s16, 47  ;;  %1272 = vset.pattern.permute.xlu1 %v1422_v1  ;;  %p385_p0 = scmp.lt.s32.totalorder %s1407_s12, 2  ;;  %v740_v29 = vld [vmem:[%s1869_s6] sm:$0xff] }
  0x1a   : > { %730 = vperm.xlu0 %1271, %v414_v0   ;;  %s1542_s19 = scalar_select %p388_p12, %s1403_s11, 2  ;;  %1273 = vset.pattern.permute.xlu2 %v1422_v1  ;;  %v1619_v37 = vld [vmem:[%s1868_s5] ss:$0 sm:$0xff] }
  0x1b   : > { %s1890_s16 = smov (!%p380_p13, %s1171_s16), 47  ;;  %s1173_s25 = sld [smem:[#allocation2 + $0x1]] }
  0x1c   : > { %s390_s22 = scalar_lea.vmem %s1866_s3, %s1542_s19  ;;  %s1172_s23 = sshll.u32 %s1890_s16, 3 }
  0x1d   : > { %s1551_s26 = scalar_lea.vmem %s1864_s1, %s1172_s23  ;;  %v1584_v16 = vld [vmem:[%s390_s22] ss:$0 sm:$0xff]  ;;  %s395_s18 = sld [smem:[#allocation2]] }
  0x1e   : > { %v403_v2 = vld [vmem:[%s1551_s26 + $0x30] sm:$0xff]  ;;  %v408_v3 = vld [vmem:[%s1551_s26 + $0x58] sm:$0xff]  ;;  %v398_v5 = vld [vmem:[%s1551_s26 + $0x8] sm:$0xff]  ;;  %s1559_s28 = scalar_select %p385_p0, %s1407_s12, 2 }
  0x1f   : > { %473 = vperm.xlu1 %1272, %v408_v3   ;;  %v399_v4 = vld [vmem:[%s1551_s26 + $0x10] sm:$0xff]  ;;  %v400_v6 = vld [vmem:[%s1551_s26 + $0x18] sm:$0xff]  ;;  %v405_v7 = vld [vmem:[%s1551_s26 + $0x40] sm:$0xff]  ;;  %p1191_p1 = scmp.ne.s32.totalorder %s1403_s11, 0 }
  0x20   : > { %s387_s20 = scalar_lea.vmem %s1865_s2, %s1559_s28  ;;  %s393_s24 = scalar_lea.vmem %s1871_s8, %s1559_s28  ;;  %v401_v8 = vld [vmem:[%s1551_s26 + $0x20] sm:$0xff]  ;;  %v406_v9 = vld [vmem:[%s1551_s26 + $0x48] sm:$0xff]  ;;  %v407_v11 = vld [vmem:[%s1551_s26 + $0x50] sm:$0xff] }
  0x21   : > { %v397_v10 = vld [vmem:[%s1551_s26] sm:$0xff]  ;;  %v404_v12 = vld [vmem:[%s1551_s26 + $0x38] sm:$0xff]  ;;  %v402_v13 = vld [vmem:[%s1551_s26 + $0x28] sm:$0xff]  ;;  %v1591_v21 = vstv %s1173_s25  ;;  %s376_s25 = sand.u32 1, %s1395_s30  }
  0x22   : > { %448 = vperm.xlu0 %1271, %v403_v2   ;;  %453 = vperm.xlu2 %1273, %v404_v12   ;;  %v409_v14 = vld [vmem:[%s1551_s26 + $0x60] sm:$0xff]  ;;  %v410_v15 = vld [vmem:[%s1551_s26 + $0x68] sm:$0xff]  ;;  %v411_v17 = vld [vmem:[%s1551_s26 + $0x70] sm:$0xff]  ;;  %s1170_s29 = sshll.u32 %s376_s25, 7 }
  0x23   : > { %v412_v23 = vld [vmem:[%s1551_s26 + $0x78] sm:$0xff]  ;;  %v1595_v26 = vstv %s395_s18  ;;  %s1759_s30 = scalar_lea.vmem [#allocation4], %s1170_s29 }
  0x27   : > { %423 = vperm.xlu1 %1272, %v398_v5  }
  0x2a   : > { %428 = vperm.xlu0 %1271, %v399_v4   ;;  %478 = vperm.xlu2 %1273, %v409_v14  }
  0x2f   : > { %458 = vperm.xlu1 %1272, %v405_v7  }
  0x32   : > { %433 = vperm.xlu0 %1271, %v400_v6   ;;  %483 = vperm.xlu2 %1273, %v410_v15  }
  0x37   : > { %463 = vperm.xlu1 %1272, %v406_v9  }
  0x3a   : > { %438 = vperm.xlu0 %1271, %v401_v8   ;;  %488 = vperm.xlu2 %1273, %v411_v17  }
  0x3f   : > { %468 = vperm.xlu1 %1272, %v407_v11  }
  0x42   : > { %418 = vperm.xlu0 %1271, %v397_v10   ;;  %493 = vperm.xlu2 %1273, %v412_v23  }
  0x47   : > { %443 = vperm.xlu1 %1272, %v402_v13  }
  0x7c   : > { %v1614_v36 = vpop.permute.xlu2 %453 }
  0x7d   : > { %v623_v53 = vsub.f32 %v1614_v36, %v1619_v37 }
  0x7f   : > { %v639_v62 = vmul.f32 %v623_v53, %v623_v53 }
  0x81   : > { %v655_v6 = vsub.f32 0.0, %v639_v62 }
  0x83   : > { %v671_v14 = vmul.f32 %v655_v6, %v1591_v21 }
  0x84   : > { %v1631_v43 = vpop.permute.xlu2 %478 }
  0x85   : > { %v628_v55 = vsub.f32 %v1631_v43, %v1619_v37 }
  0x87   : > { %v644_v0 = vmul.f32 %v628_v55, %v628_v55 }
  0x89   : > { %v660_v9 = vsub.f32 0.0, %v644_v0 }
  0x8c   : > { %v1587_v18 = vpop.permute.xlu0 %730  ;;  %v1644_v58 = vpop.permute.xlu2 %483 }
  0x8d   : > { %v733_v19 = vsub.f32 %v1587_v18, %v1584_v16  ;;  %v629_v10 = vsub.f32 %v1644_v58, %v1619_v37 }
  0x8f   : > { %v734_v20 = vmul.f32 %v733_v19, %v733_v19  ;;  %v676_v19 = vmul.f32 %v660_v9, %v1591_v21 }
  0x91   : > { %v735_v22 = vsub.f32 0.0, %v734_v20  ;;  %v1608_v33 = vpop.permute.xlu1 %473  ;;  %v645_v20 = vmul.f32 %v629_v10, %v629_v10 }
  0x92   : > { %v627_v44 = vsub.f32 %v1608_v33, %v1619_v37 }
  0x93   : > { %v736_v24 = vmul.f32 %v735_v22, %v1591_v21 }
  0x94   : > { %v1602_v30 = vpop.permute.xlu0 %448  ;;  %v643_v48 = vmul.f32 %v627_v44, %v627_v44  ;;  %v1659_v17 = vpop.permute.xlu2 %488 }
  0x95   : > { %v737_v25 = vmul.f32 1.442695, %v736_v24  ;;  %v622_v39 = vsub.f32 %v1602_v30, %v1619_v37  ;;  %v630_v44 = vsub.f32 %v1659_v17, %v1619_v37 }
  0x96   : > { %v659_v54 = vsub.f32 0.0, %v643_v48 }
  0x97   : > { %1276 = vpow2.f32 %v737_v25  ;;  %v638_v45 = vmul.f32 %v622_v39, %v622_v39 }
  0x98   : > { %v675_v63 = vmul.f32 %v659_v54, %v1591_v21  ;;  %v646_v54 = vmul.f32 %v630_v44, %v630_v44 }
  0x99   : > { %v1612_v35 = vpop.permute.xlu1 %423  ;;  %v654_v49 = vsub.f32 0.0, %v638_v45 }
  0x9a   : > { %v617_v42 = vsub.f32 %v1612_v35, %v1619_v37  ;;  %v702_v8 = vmul.f32 1.442695, %v675_v63  ;;  %v662_v6 = vsub.f32 0.0, %v646_v54 }
  0x9b   : > { %v670_v57 = vmul.f32 %v654_v49, %v1591_v21 }
  0x9c   : > { %v1604_v31 = vpop.permute.xlu0 %428  ;;  %v633_v47 = vmul.f32 %v617_v42, %v617_v42  ;;  %v661_v42 = vsub.f32 0.0, %v645_v20 }
  0x9d   : > { %v1277_v27 = vpop.eup %1276  ;;  %v618_v50 = vsub.f32 %v1604_v31, %v1619_v37  ;;  %v692_v1 = vmul.f32 1.442695, %v670_v57 }
  0x9e   : > { %v739_v28 = vmul.f32 %v1277_v27, %v1595_v26  ;;  %v649_v52 = vsub.f32 0.0, %v633_v47  ;;  %v694_v27 = vmul.f32 1.442695, %v671_v14  ;;  %v677_v53 = vmul.f32 %v661_v42, %v1591_v21 }
  0x9f   : > { %v634_v59 = vmul.f32 %v618_v50, %v618_v50  ;;  %1278 = vpow2.f32 %v692_v1 }
  0xa0   : > { %760 = vmatpush.msra.mxu0 %v739_v28  ;;  %v665_v61 = vmul.f32 %v649_v52, %v1591_v21 }
  0xa1   : > { %1174 = vmatmul.msk.f32.vlgmr.msra.gmra.mxu0 %vm741_vm0, %v740_v29  ;;  %v1627_v41 = vpop.permute.xlu1 %458  ;;  %v650_v2 = vsub.f32 0.0, %v634_v59  ;;  %v1675_v59 = vpop.permute.xlu2 %493 }
  0xa2   : > { %v682_v5 = vmul.f32 1.442695, %v665_v61  ;;  %v624_v7 = vsub.f32 %v1627_v41, %v1619_v37 }
  0xa3   : > { %v666_v11 = vmul.f32 %v650_v2, %v1591_v21 }
  0xa4   : > { %v1606_v32 = vpop.permute.xlu0 %433  ;;  %v640_v15 = vmul.f32 %v624_v7, %v624_v7  ;;  %v631_v7 = vsub.f32 %v1675_v59, %v1619_v37 }
  0xa5   : > { %v619_v3 = vsub.f32 %v1606_v32, %v1619_v37  ;;  %v684_v22 = vmul.f32 1.442695, %v666_v11  ;;  %v1279_v25 = vpop.eup %1278 }
  0xa6   : > { %v656_v28 = vsub.f32 0.0, %v640_v15  ;;  %v678_v15 = vmul.f32 %v662_v6, %v1591_v21 }
  0xa7   : > { %v635_v12 = vmul.f32 %v619_v3, %v619_v3 }
  0xa8   : > { %v672_v49 = vmul.f32 %v656_v28, %v1591_v21 }
  0xa9   : > { %v1641_v56 = vpop.permute.xlu1 %463  ;;  %v651_v23 = vsub.f32 0.0, %v635_v12 }
  0xaa   : > { %v625_v29 = vsub.f32 %v1641_v56, %v1619_v37  ;;  %v696_v1 = vmul.f32 1.442695, %v672_v49 }
  0xab   : > { %v667_v47 = vmul.f32 %v651_v23, %v1591_v21 }
  0xac   : > { %v1610_v34 = vpop.permute.xlu0 %438  ;;  %v641_v50 = vmul.f32 %v625_v29, %v625_v29  ;;  %v708_v29 = vmul.f32 1.442695, %v678_v15 }
  0xad   : > { %v620_v24 = vsub.f32 %v1610_v34, %v1619_v37  ;;  %v686_v62 = vmul.f32 1.442695, %v667_v47 }
  0xae   : > { %v657_v2 = vsub.f32 0.0, %v641_v50 }
  0xaf   : > { %v636_v48 = vmul.f32 %v620_v24, %v620_v24 }
  0xb0   : > { %v673_v12 = vmul.f32 %v657_v2, %v1591_v21 }
  0xb1   : > { %v1656_v13 = vpop.permute.xlu1 %468  ;;  %v652_v63 = vsub.f32 0.0, %v636_v48 }
  0xb2   : > { %v626_v0 = vsub.f32 %v1656_v13, %v1619_v37 }
  0xb3   : > { %v668_v10 = vmul.f32 %v652_v63, %v1591_v21 }
  0xb4   : > { %v1621_v38 = vpop.permute.xlu0 %418  ;;  %v642_v11 = vmul.f32 %v626_v0, %v626_v0 }
  0xb5   : > { %v616_v40 = vsub.f32 %v1621_v38, %v1619_v37  ;;  %v688_v23 = vmul.f32 1.442695, %v668_v10  ;;  %v499_v6 = vsub.f32 %v1621_v38, %v1584_v16  ;;  %v510_v10 = vsub.f32 %v1608_v33, %v1584_v16 }
  0xb6   : > { %v658_v24 = vsub.f32 0.0, %v642_v11 }
  0xb7   : > { %v632_v46 = vmul.f32 %v616_v40, %v616_v40  ;;  %v704_v40 = vmul.f32 1.442695, %v676_v19  ;;  %v647_v19 = vmul.f32 %v631_v7, %v631_v7 }
  0xb8   : > { %v674_v44 = vmul.f32 %v658_v24, %v1591_v21 }
  0xb9   : > { %v648_v51 = vsub.f32 0.0, %v632_v46  ;;  %v1672_v55 = vpop.permute.xlu1 %443 }
  0xba   : > { %v621_v3 = vsub.f32 %v1672_v55, %v1619_v37  ;;  %v700_v50 = vmul.f32 1.442695, %v674_v44 }
  0xbb   : > { %v664_v60 = vmul.f32 %v648_v51, %v1591_v21 }
  0xbc   : > { %v637_v14 = vmul.f32 %v621_v3, %v621_v3 }
  0xbd   : > { %v680_v4 = vmul.f32 1.442695, %v664_v60  ;;  %v718_v60 = vmul.f32 %v1279_v25, %v1595_v26  ;;  %v698_v25 = vmul.f32 1.442695, %v673_v12  ;;  %v501_v12 = vsub.f32 %v1604_v31, %v1584_v16 }
  0xbe   : > { %v502_v31 = vsub.f32 %v1606_v32, %v1584_v16 }
  0xbf   : > { %1280 = vpow2.f32 %v680_v4 }
  0xc0   : > { %1282 = vpow2.f32 %v682_v5  ;;  %v706_v5 = vmul.f32 1.442695, %v677_v53 }
  0xc1   : > { %1284 = vpow2.f32 %v702_v8 }
  0xc2   : > { %1286 = vpow2.f32 %v684_v22 }
  0xc3   : > { %1288 = vpow2.f32 %v694_v27  ;;  %v653_v27 = vsub.f32 0.0, %v637_v14 }
  0xc4   : > { %1290 = vpow2.f32 %v704_v40 }
  0xc5   : > { %v1281_v39 = vpop.eup %1280  ;;  %1292 = vpow2.f32 %v686_v62 }
  0xc6   : > { %v1283_v45 = vpop.eup %1282  ;;  %v712_v52 = vmul.f32 %v1281_v39, %v1595_v26  ;;  %1294 = vpow2.f32 %v696_v1  ;;  %v663_v39 = vsub.f32 0.0, %v647_v19  ;;  %v526_v19 = vmul.f32 %v510_v10, %v510_v10 }
  0xc7   : > { %v1285_v46 = vpop.eup %1284  ;;  %v713_v57 = vmul.f32 %v1283_v45, %v1595_v26  ;;  %1296 = vpow2.f32 %v706_v5  ;;  %v669_v45 = vmul.f32 %v653_v27, %v1591_v21  ;;  %v500_v5 = vsub.f32 %v1612_v35, %v1584_v16 }
  0xc8   : > { %v723_v61 = vmul.f32 %v1285_v46, %v1595_v26  ;;  %v1287_v4 = vpop.eup %1286  ;;  %1298 = vpow2.f32 %v688_v23  ;;  %v679_v46 = vmul.f32 %v663_v39, %v1591_v21  ;;  %v542_v33 = vsub.f32 0.0, %v526_v19 }
  0xc9   : > { %v1289_v8 = vpop.eup %1288  ;;  %v714_v20 = vmul.f32 %v1287_v4, %v1595_v26  ;;  %1300 = vpow2.f32 %v698_v25  ;;  %v516_v7 = vmul.f32 %v500_v5, %v500_v5  ;;  %v504_v10 = vsub.f32 %v1672_v55, %v1584_v16 }
  0xca   : > { %v1291_v9 = vpop.eup %1290  ;;  %v719_v22 = vmul.f32 %v1289_v8, %v1595_v26  ;;  %1302 = vpow2.f32 %v708_v29  ;;  %v710_v53 = vmul.f32 1.442695, %v679_v46  ;;  %v515_v8 = vmul.f32 %v499_v6, %v499_v6 }
  0xcb   : > { %v724_v37 = vmul.f32 %v1291_v9, %v1595_v26  ;;  %v1293_v28 = vpop.eup %1292  ;;  %1304 = vpow2.f32 %v700_v50  ;;  %v505_v9 = vsub.f32 %v1602_v30, %v1584_v16  ;;  %v532_v11 = vsub.f32 0.0, %v516_v7 }
  0xcc   : > { %v1295_v40 = vpop.eup %1294  ;;  %v715_v47 = vmul.f32 %v1293_v28, %v1595_v26  ;;  %v531_v14 = vsub.f32 0.0, %v515_v8  ;;  %v511_v30 = vsub.f32 %v1631_v43, %v1584_v16  ;;  %v559_v39 = vmul.f32 %v1591_v21, %v542_v33 }
  0xcd   : > { %v1297_v42 = vpop.eup %1296  ;;  %v720_v48 = vmul.f32 %v1295_v40, %v1595_v26  ;;  %v521_v15 = vmul.f32 %v505_v9, %v505_v9  ;;  %v549_v35 = vmul.f32 %v1591_v21, %v532_v11  ;;  %v518_v40 = vmul.f32 %v502_v31, %v502_v31 }
  0xce   : > { %v725_v49 = vmul.f32 %v1297_v42, %v1595_v26  ;;  %v548_v38 = vmul.f32 %v1591_v21, %v531_v14  ;;  %v527_v29 = vmul.f32 %v511_v30, %v511_v30  ;;  %v507_v43 = vsub.f32 %v1627_v41, %v1584_v16 }
  0xcf   : > { %v566_v23 = vmul.f32 1.442695, %v549_v35  ;;  %v586_v32 = vmul.f32 1.442695, %v559_v39  ;;  %v512_v46 = vsub.f32 %v1644_v58, %v1584_v16  ;;  %v520_v35 = vmul.f32 %v504_v10, %v504_v10 }
  0xd0   : > { %v564_v25 = vmul.f32 1.442695, %v548_v38 }
 0x11e   : > { %v762_v51 = vpop.f32.mrf.mxu0 }
 0x11f   : > { %828 = vmatpush.msrb.mxu0 %v762_v51  ;;  %1198 = vmatpush.msra.mxu1 %v762_v51 }
 0x120   : > { %1199 = vmatpush.msra.mxu2 %v762_v51  ;;  %1200 = vmatpush.msra.mxu3 %v762_v51  ;;  %v690_v51 = vmul.f32 1.442695, %v669_v45  ;;  %v543_v45 = vsub.f32 0.0, %v527_v29  ;;  %v514_v29 = vsub.f32 %v1675_v59, %v1584_v16 }
 0x121   : > { %1175 = vmatmul.msk.f32.vlgmr.msrb.gmra.mxu0 %vm741_vm0, %v712_v52  ;;  %1176 = vmatmul.msk.f32.vlgmr.msra.gmra.mxu1 %vm741_vm0, %v713_v57  ;;  %v1299_v52 = vpop.eup %1298 }
 0x122   : > { %1181 = vmatmul.msk.f32.vlgmr.msra.gmra.mxu2 %vm741_vm0, %v718_v60  ;;  %1186 = vmatmul.msk.f32.vlgmr.msra.gmra.mxu3 %vm741_vm0, %v723_v61  ;;  %v1301_v54 = vpop.eup %1300  ;;  %1306 = vpow2.f32 %v690_v51  ;;  %v716_v60 = vmul.f32 %v1299_v52, %v1595_v26  ;;  %v523_v51 = vmul.f32 %v507_v43, %v507_v43  ;;  %v560_v41 = vmul.f32 %v1591_v21, %v543_v45 }
 0x123   : > { %v1303_v57 = vpop.eup %1302  ;;  %1308 = vpow2.f32 %v710_v53  ;;  %v721_v61 = vmul.f32 %v1301_v54, %v1595_v26  ;;  %v528_v54 = vmul.f32 %v512_v46, %v512_v46  ;;  %v536_v43 = vsub.f32 0.0, %v520_v35 }
 0x124   : > { %v726_v62 = vmul.f32 %v1303_v57, %v1595_v26  ;;  %v1305_v63 = vpop.eup %1304  ;;  %1310 = vpow2.f32 %v566_v23  ;;  %v509_v23 = vsub.f32 %v1656_v13, %v1584_v16  ;;  %v530_v46 = vmul.f32 %v514_v29, %v514_v29 }
 0x125   : > { %v722_v3 = vmul.f32 %v1305_v63, %v1595_v26  ;;  %1312 = vpow2.f32 %v564_v25  ;;  %v588_v63 = vmul.f32 1.442695, %v560_v41 }
 0x126   : > { %v525_v45 = vmul.f32 %v509_v23, %v509_v23 }
 0x128   : > { %v1307_v0 = vpop.eup %1306 }
 0x129   : > { %1177 = vmatmul.msk.f32.gmra.mxu1 %vm741_vm0, %v714_v20  ;;  %v1309_v1 = vpop.eup %1308  ;;  %v717_v2 = vmul.f32 %v1307_v0, %v1595_v26  ;;  %v517_v20 = vmul.f32 %v501_v12, %v501_v12  ;;  %v508_v0 = vsub.f32 %v1641_v56, %v1584_v16 }
 0x12a   : > { %1182 = vmatmul.msk.f32.gmra.mxu2 %vm741_vm0, %v719_v22  ;;  %1187 = vmatmul.msk.f32.gmra.mxu3 %vm741_vm0, %v724_v37  ;;  %v727_v4 = vmul.f32 %v1309_v1, %v1595_v26  ;;  %v537_v22 = vsub.f32 0.0, %v521_v15  ;;  %v506_v37 = vsub.f32 %v1614_v36, %v1584_v16  ;;  %v1311_v50 = vpop.eup %1310 }
 0x12b   : > { %v533_v24 = vsub.f32 0.0, %v517_v20  ;;  %v1313_v52 = vpop.eup %1312  ;;  %v524_v14 = vmul.f32 %v508_v0, %v508_v0 }
 0x12c   : > { %v554_v27 = vmul.f32 %v1591_v21, %v537_v22  ;;  %v522_v28 = vmul.f32 %v506_v37, %v506_v37 }
 0x12d   : > { %v550_v36 = vmul.f32 %v1591_v21, %v533_v24  ;;  %v540_v33 = vsub.f32 0.0, %v524_v14 }
 0x12e   : > { %v576_v42 = vmul.f32 1.442695, %v554_v27  ;;  %v538_v44 = vsub.f32 0.0, %v522_v28 }
 0x12f   : > { %v557_v13 = vmul.f32 %v1591_v21, %v540_v33 }
 0x130   : > { %1314 = vpow2.f32 %v576_v42  ;;  %v555_v53 = vmul.f32 %v1591_v21, %v538_v44 }
 0x131   : > { %1178 = vmatmul.msk.f32.gmra.mxu1 %vm741_vm0, %v715_v47  ;;  %v568_v47 = vmul.f32 1.442695, %v550_v36  ;;  %1316 = vpow2.f32 %v586_v32 }
 0x132   : > { %1183 = vmatmul.msk.f32.gmra.mxu2 %vm741_vm0, %v720_v48  ;;  %1188 = vmatmul.msk.f32.gmra.mxu3 %vm741_vm0, %v725_v49  ;;  %v534_v48 = vsub.f32 0.0, %v518_v40  ;;  %v503_v49 = vsub.f32 %v1610_v34, %v1584_v16  ;;  %v598_v34 = vmul.f32 %v1311_v50, %v1595_v26 }
 0x133   : > { %1318 = vpow2.f32 %v568_v47 }
 0x134   : > { %v551_v58 = vmul.f32 %v1591_v21, %v534_v48  ;;  %v519_v57 = vmul.f32 %v503_v49, %v503_v49 }
 0x136   : > { %v1315_v7 = vpop.eup %1314  ;;  %v570_v8 = vmul.f32 1.442695, %v551_v58  ;;  %v535_v9 = vsub.f32 0.0, %v519_v57  ;;  %v546_v57 = vsub.f32 0.0, %v530_v46 }
 0x137   : > { %v1317_v11 = vpop.eup %1316  ;;  %v603_v19 = vmul.f32 %v1315_v7, %v1595_v26 }
 0x138   : > { %v552_v55 = vmul.f32 %v1591_v21, %v535_v9  ;;  %v608_v20 = vmul.f32 %v1317_v11, %v1595_v26 }
 0x139   : > { %1179 = vmatmul.msk.f32.gmra.mxu1 %vm741_vm0, %v716_v60  ;;  %v539_v60 = vsub.f32 0.0, %v523_v51  ;;  %v1319_v56 = vpop.eup %1318  ;;  %v582_v51 = vmul.f32 1.442695, %v557_v13 }
 0x13a   : > { %1184 = vmatmul.msk.f32.gmra.mxu2 %vm741_vm0, %v721_v61  ;;  %1189 = vmatmul.msk.f32.gmra.mxu3 %vm741_vm0, %v726_v62  ;;  %v597_v61 = vmul.f32 %v1313_v52, %v1595_v26  ;;  %v578_v62 = vmul.f32 1.442695, %v555_v53  ;;  %v599_v30 = vmul.f32 %v1319_v56, %v1595_v26  ;;  %v572_v40 = vmul.f32 1.442695, %v552_v55 }
 0x13b   : > { %v556_v12 = vmul.f32 %v1591_v21, %v539_v60  ;;  %v541_v52 = vsub.f32 0.0, %v525_v45 }
 0x13c   : > { %1320 = vpow2.f32 %v578_v62 }
 0x13d   : > { %1322 = vpow2.f32 %v588_v63  ;;  %v580_v38 = vmul.f32 1.442695, %v556_v12  ;;  %v558_v0 = vmul.f32 %v1591_v21, %v541_v52 }
 0x13e   : > { %1324 = vpow2.f32 %v570_v8 }
 0x13f   : > { %1326 = vpow2.f32 %v580_v38  ;;  %v584_v7 = vmul.f32 1.442695, %v558_v0 }
 0x141   : > { %1180 = vmatmul.msk.f32.gmra.mxu1 %vm741_vm0, %v717_v2 }
 0x142   : > { %1185 = vmatmul.msk.f32.gmra.mxu2 %vm741_vm0, %v722_v3  ;;  %1190 = vmatmul.msk.f32.gmra.mxu3 %vm741_vm0, %v727_v4  ;;  %v544_v3 = vsub.f32 0.0, %v528_v54  ;;  %v513_v4 = vsub.f32 %v1659_v17, %v1584_v16  ;;  %v1321_v36 = vpop.eup %1320  ;;  %v553_v16 = vmul.f32 %v1591_v21, %v536_v43 }
 0x143   : > { %v1323_v42 = vpop.eup %1322  ;;  %v604_v59 = vmul.f32 %v1321_v36, %v1595_v26 }
 0x144   : > { %v561_v17 = vmul.f32 %v1591_v21, %v544_v3  ;;  %v529_v15 = vmul.f32 %v513_v4, %v513_v4  ;;  %v1325_v44 = vpop.eup %1324  ;;  %v609_v47 = vmul.f32 %v1323_v42, %v1595_v26 }
 0x145   : > { %v600_v50 = vmul.f32 %v1325_v44, %v1595_v26 }
 0x146   : > { %v590_v27 = vmul.f32 1.442695, %v561_v17  ;;  %v545_v28 = vsub.f32 0.0, %v529_v15 }
 0x148   : > { %1328 = vpow2.f32 %v590_v27  ;;  %v562_v32 = vmul.f32 %v1591_v21, %v545_v28 }
 0x149   : > { %1330 = vpow2.f32 %v572_v40 }
 0x14a   : > { %v592_v58 = vmul.f32 1.442695, %v562_v32  ;;  %1332 = vpow2.f32 %v582_v51 }
 0x14c   : > { %1334 = vpow2.f32 %v592_v58 }
 0x19e   : > { %v830_v1 = vpop.f32.mrf.mxu0  ;;  %v833_v2 = vpop.f32.mrf.mxu1 }
 0x19f   : > { %v878_v5 = vadd.f32 %v830_v1, %v597_v61  ;;  %v879_v6 = vadd.f32 %v833_v2, %v598_v34  ;;  %v1327_v61 = vpop.eup %1326  ;;  %v574_v34 = vmul.f32 1.442695, %v553_v16  ;;  %v563_v1 = vmul.f32 %v1591_v21, %v546_v57 }
 0x1a0   : > { %v1329_v62 = vpop.eup %1328  ;;  %v605_v2 = vmul.f32 %v1327_v61, %v1595_v26 }
 0x1a1   : > { %894 = vst [vmem:[%s1759_s30] sm:$0xff] %v878_v5  ;;  %v1331_v63 = vpop.eup %1330  ;;  %1336 = vpow2.f32 %v574_v34  ;;  %v610_v3 = vmul.f32 %v1329_v62, %v1595_v26  ;;  %v594_v11 = vmul.f32 1.442695, %v563_v1 }
 0x1a2   : > { %895 = vst [vmem:[%s1759_s30 + $0x8] sm:$0xff] %v879_v6  ;;  %v601_v6 = vmul.f32 %v1331_v63, %v1595_v26  ;;  %v1333_v56 = vpop.eup %1332  ;;  %1338 = vpow2.f32 %v584_v7 }
 0x1a3   : > { %v1335_v14 = vpop.eup %1334  ;;  %1340 = vpow2.f32 %v594_v11  ;;  %v606_v15 = vmul.f32 %v1333_v56, %v1595_v26 }
 0x1a5   : > { %v848_v22 = vpop.f32.mrf.mxu2  ;;  %v863_v37 = vpop.f32.mrf.mxu3 }
 0x1a6   : > { %v884_v24 = vadd.f32 %v848_v22, %v603_v19  ;;  %v889_v31 = vadd.f32 %v863_v37, %v608_v20  ;;  %v836_v25 = vpop.f32.mrf.mxu1  ;;  %v611_v19 = vmul.f32 %v1335_v14, %v1595_v26 }
 0x1a7   : > { %v880_v39 = vadd.f32 %v836_v25, %v599_v30  ;;  %v1337_v17 = vpop.eup %1336 }
 0x1a8   : > { %900 = vst [vmem:[%s1759_s30 + $0x30] sm:$0xff] %v884_v24  ;;  %v602_v20 = vmul.f32 %v1337_v17, %v1595_v26  ;;  %v1339_v33 = vpop.eup %1338 }
 0x1a9   : > { %905 = vst [vmem:[%s1759_s30 + $0x58] sm:$0xff] %v889_v31  ;;  %v1341_v23 = vpop.eup %1340  ;;  %v607_v24 = vmul.f32 %v1339_v33, %v1595_v26 }
 0x1aa   : > { %896 = vst [vmem:[%s1759_s30 + $0x10] sm:$0xff] %v880_v39  ;;  %v612_v31 = vmul.f32 %v1341_v23, %v1595_v26 }
 0x1ad   : > { %v851_v48 = vpop.f32.mrf.mxu2  ;;  %v866_v49 = vpop.f32.mrf.mxu3 }
 0x1ae   : > { %v885_v53 = vadd.f32 %v851_v48, %v604_v59  ;;  %v890_v41 = vadd.f32 %v866_v49, %v609_v47  ;;  %v839_v54 = vpop.f32.mrf.mxu1 }
 0x1af   : > { %v881_v60 = vadd.f32 %v839_v54, %v600_v50 }
 0x1b0   : > { %901 = vst [vmem:[%s1759_s30 + $0x38] sm:$0xff] %v885_v53 }
 0x1b1   : > { %906 = vst [vmem:[%s1759_s30 + $0x60] sm:$0xff] %v890_v41 }
 0x1b2   : > { %897 = vst [vmem:[%s1759_s30 + $0x18] sm:$0xff] %v881_v60 }
 0x1b5   : > { %v854_v4 = vpop.f32.mrf.mxu2  ;;  %v869_v5 = vpop.f32.mrf.mxu3 }
 0x1b6   : > { %v886_v8 = vadd.f32 %v854_v4, %v605_v2  ;;  %v891_v9 = vadd.f32 %v869_v5, %v610_v3  ;;  %v842_v10 = vpop.f32.mrf.mxu1 }
 0x1b7   : > { %v882_v12 = vadd.f32 %v842_v10, %v601_v6 }
 0x1b8   : > { %902 = vst [vmem:[%s1759_s30 + $0x40] sm:$0xff] %v886_v8 }
 0x1b9   : > { %907 = vst [vmem:[%s1759_s30 + $0x68] sm:$0xff] %v891_v9 }
 0x1ba   : > { %898 = vst [vmem:[%s1759_s30 + $0x20] sm:$0xff] %v882_v12 }
 0x1bd   : > { %v857_v55 = vpop.f32.mrf.mxu2  ;;  %v872_v35 = vpop.f32.mrf.mxu3 }
 0x1be   : > { %v887_v38 = vadd.f32 %v857_v55, %v606_v15  ;;  %v892_v22 = vadd.f32 %v872_v35, %v611_v19  ;;  %v845_v37 = vpop.f32.mrf.mxu1 }
 0x1bf   : > { %v883_v30 = vadd.f32 %v845_v37, %v602_v20 }
 0x1c0   : > { %903 = vst [vmem:[%s1759_s30 + $0x48] sm:$0xff] %v887_v38 }
 0x1c1   : > { %908 = vst [vmem:[%s1759_s30 + $0x70] sm:$0xff] %v892_v22 }
 0x1c2   : > { %899 = vst [vmem:[%s1759_s30 + $0x28] sm:$0xff] %v883_v30 }
 0x1c5   : > { %v860_v25 = vpop.f32.mrf.mxu2  ;;  %v875_v27 = vpop.f32.mrf.mxu3  ;;  %913 = sbr.rel (%p1191_p1) target bundleno = 590 (0x24e), region = 60 }
 0x1c6   : > { %v888_v28 = vadd.f32 %v860_v25, %v607_v24  ;;  %v893_v29 = vadd.f32 %v875_v27, %v612_v31 }
 0x1c8   : > { %904 = vst [vmem:[%s1759_s30 + $0x50] sm:$0xff] %v888_v28 }
 0x1c9   : > { %909 = vst [vmem:[%s1759_s30 + $0x78] sm:$0xff] %v893_v29 }
 0x1ca   : > { %v925_v39 = vld [vmem:[%s1870_s7] sm:$0xff]  ;;  %v1423_v36 = vmov 0  }
 0x1cb   : > { %1342 = vset.pattern.permute.xlu0 %v1423_v36  ;;  %v1343_v40 = vld [vmem:[%s387_s20] ss:$0 sm:$0xff] }
 0x1cc   : > { %928 = vperm.xlu0 %1342, %v925_v39   ;;  %v918_v43 = vsub.f32 %v1587_v18, %v1343_v40 }
 0x1ce   : > { %v919_v42 = vmul.f32 %v918_v43, %v918_v43 }
 0x1d0   : > { %v920_v44 = vsub.f32 0.0, %v919_v42 }
 0x1d2   : > { %v921_v13 = vmul.f32 %v920_v44, %v1591_v21 }
 0x1d4   : > { %v922_v45 = vmul.f32 1.442695, %v921_v13 }
 0x1d6   : > { %1344 = vpow2.f32 %v922_v45 }
 0x1dc   : > { %v1345_v32 = vpop.eup %1344 }
 0x1dd   : > { %v924_v46 = vmul.f32 %v1345_v32, %v1595_v26 }
 0x23e   : > { %v929_v16 = vpop.permute.xlu0 %928 }
 0x23f   : > { %v931_v59 = vmul.f32 %v929_v16, %v924_v46 }
 0x241   : > { %v932_v47 = vrot.slane %v931_v59, 4 }
 0x243   : > { %v933_v48 = vadd.f32 %v932_v47, %v931_v59 }
 0x245   : > { %v934_v49 = vrot.slane %v933_v48, 2 }
 0x247   : > { %v935_v50 = vadd.f32 %v934_v49, %v933_v48 }
 0x249   : > { %v936_v51 = vrot.slane %v935_v50, 1 }
 0x24b   : > { %v937_v52 = vadd.f32 %v936_v51, %v935_v50 }
 0x24d   : > { %938 = vst [vmem:[%s393_s24] sm:$0x1] %v937_v52 }
 0x24e PF: > { %951 = sbr.rel (!%p1521_p5) target bundleno = 612 (0x264), region = 68  ;;  %v1015_v18 = vld [vmem:[%s1759_s30] sm:$0xff] (%p1521_p5)  ;;  %v1017_v21 = vld [vmem:[%s1759_s30 + $0x8] sm:$0xff] (%p1521_p5)  ;;  %v1019_v26 = vld [vmem:[%s1759_s30 + $0x10] sm:$0xff] (%p1521_p5) }
 0x24f   : > { %s1201_s23 = smul.u32 (%p1521_p5), 48, %s1407_s12  ;;  %v1021_v53 = vld [vmem:[%s1759_s30 + $0x18] sm:$0xff] (%p1521_p5)  ;;  %v1023_v41 = vld [vmem:[%s1759_s30 + $0x20] sm:$0xff] (%p1521_p5)  ;;  %v1025_v54 = vld [vmem:[%s1759_s30 + $0x28] sm:$0xff] (%p1521_p5) }
 0x250   : > { %v1027_v58 = vld [vmem:[%s1759_s30 + $0x30] sm:$0xff] (%p1521_p5)  ;;  %v1029_v57 = vld [vmem:[%s1759_s30 + $0x38] sm:$0xff] (%p1521_p5)  ;;  %v1031_v60 = vld [vmem:[%s1759_s30 + $0x40] sm:$0xff] (%p1521_p5) }
 0x251   : > { %s954_s25 = sadd.s32 (%p1521_p5), %s1403_s11, %s1201_s23  ;;  %v1033_v61 = vld [vmem:[%s1759_s30 + $0x48] sm:$0xff] (%p1521_p5)  ;;  %v1037_v62 = vld [vmem:[%s1759_s30 + $0x58] sm:$0xff] (%p1521_p5)  ;;  %v1039_v63 = vld [vmem:[%s1759_s30 + $0x60] sm:$0xff] (%p1521_p5) }
 0x252   : > { %s1195_s28 = sshll.u32 (%p1521_p5), %s954_s25, 3  ;;  %v1041_v0 = vld [vmem:[%s1759_s30 + $0x68] sm:$0xff] (%p1521_p5)  ;;  %v1043_v1 = vld [vmem:[%s1759_s30 + $0x70] sm:$0xff] (%p1521_p5) }
 0x253   : > { %s956_s21 = scalar_lea.vmem %s1872_s9, %s1195_s28  ;;  %v1035_v34 = vld [vmem:[%s1759_s30 + $0x50] sm:$0xff] }
 0x254   : > { %1016 = vst [vmem:[%s956_s21] sm:$0xff] %v1015_v18  ;;  %v1045_v2 = vld [vmem:[%s1759_s30 + $0x78] sm:$0xff] }
 0x255   : > { %1018 = vst [vmem:[%s956_s21 + $0x18] sm:$0xff] %v1017_v21 }
 0x256   : > { %1020 = vst [vmem:[%s956_s21 + $0x30] sm:$0xff] %v1019_v26 }
 0x257   : > { %1022 = vst [vmem:[%s956_s21 + $0x48] sm:$0xff] %v1021_v53 }
 0x258   : > { %1024 = vst [vmem:[%s956_s21 + $0x60] sm:$0xff] %v1023_v41 }
 0x259   : > { %1026 = vst [vmem:[%s956_s21 + $0x78] sm:$0xff] %v1025_v54 }
 0x25a   : > { %1028 = vst [vmem:[%s956_s21 + $0x90] sm:$0xff] %v1027_v58 }
 0x25b   : > { %1030 = vst [vmem:[%s956_s21 + $0xa8] sm:$0xff] %v1029_v57 }
 0x25c   : > { %1032 = vst [vmem:[%s956_s21 + $0xc0] sm:$0xff] %v1031_v60 }
 0x25d   : > { %1034 = vst [vmem:[%s956_s21 + $0xd8] sm:$0xff] %v1033_v61 }
 0x25e   : > { %1036 = vst [vmem:[%s956_s21 + $0xf0] sm:$0xff] %v1035_v34 }
 0x25f   : > { %1038 = vst [vmem:[%s956_s21 + $0x108] sm:$0xff] %v1037_v62 }
 0x260   : > { %1040 = vst [vmem:[%s956_s21 + $0x120] sm:$0xff] %v1039_v63 }
 0x261   : > { %1042 = vst [vmem:[%s956_s21 + $0x138] sm:$0xff] %v1041_v0 }
 0x262   : > { %1044 = vst [vmem:[%s956_s21 + $0x150] sm:$0xff] %v1043_v1 }
 0x263   : > { %1046 = vst [vmem:[%s956_s21 + $0x168] sm:$0xff] %v1045_v2 }
 0x264 PF: > { %s21_s15 = sadd.s32 1, %s1419_s15   ;;  %s1876_s16 = sld [smem:[#allocation6_spill]] }
 0x265   : > { %p18_p2 = scmp.ge.s32.totalorder %s21_s15, 11   ;;  %s1877_s30 = smov %s1399_s10 }
 0x266   : > { %s1878_s10 = smov %s1534_s27  ;;  %s1879_s11 = smov %s1411_s13 }
 0x267   : > { %s1880_s12 = smov %s1415_s14  ;;  %s1881_s13 = smov %s1884_s17 }
 0x268   :  { %20 = sbr.rel (!%p18_p2) target bundleno = 4 (0x4), region = 147 }
 0x26a   : > { %s1882_s14 = smov %s1876_s16 }
 0x26d   :  { %1068 = vsyncpa [#allocation3], 1 }
 0x26e   :  { %1070 = vsyncpa [#allocation3 + $0x1], 1 }

</bundles_post_ra>
